<compile_context>
chip_gen: v5e
topology: v5e:2x2
jax: 0.10.0
libtpu: 0.0.40
codegen_flags: <defaults>
</compile_context>

<pallas_src>
import jax
import jax.numpy as jnp
from jax import lax
from jax.experimental import pallas as pl
from jax.experimental.pallas import tpu as pltpu


def _round_up(x, m):
    return (x + m - 1) // m * m


# ---------------------------------------------------------------------------
# Pallas kernel
# ---------------------------------------------------------------------------
def gru_codeemb_kernel(lens_ref, gi_ref, whh_ref, bhn_ref, wout_ref, bout_ref,
                       out_ref, h_ref, sel_ref):
    """GRU recurrence over one time chunk for one batch block.

    Grid = (num_batch_blocks, num_time_chunks); time axis is 'arbitrary'.

    lens_ref : (TB, 1)        i32  per-row sequence length (0 for padded rows)
    gi_ref   : (TT, TB, 3*Hp) f32  precomputed input gates x@W_i + b_i (r|z|n)
    whh_ref  : (Hp, 3*Hp)     f32  fused hidden weights (r|z|n)
    bhn_ref  : (1, Hp)        f32  hidden bias of the n gate (kept separate)
    wout_ref : (Hp, Op)       f32  output_fc weight (transposed)
    bout_ref : (1, Op)        f32  output_fc bias
    out_ref  : (TB, Op)       f32  final linear output (written on last chunk)
    h_ref    : (TB, Hp)       f32  VMEM scratch: running hidden state
    sel_ref  : (TB, Hp)       f32  VMEM scratch: hidden state frozen at len-1
    """
    tc = pl.program_id(1)                 # time-chunk index
    TT = gi_ref.shape[0]
    Hp = whh_ref.shape[0]

    @pl.when(tc == 0)
    def _init():
        h_ref[...] = jnp.zeros_like(h_ref)
        sel_ref[...] = jnp.zeros_like(sel_ref)

    # loop-invariant loads hoisted out of the recurrence
    lens_m1 = lens_ref[...] - 1           # (TB, 1) i32
    bhn = bhn_ref[...]                    # (1, Hp)
    whh = whh_ref[...]                    # (Hp, 3Hp)

    def step(i, carry):
        h, sel = carry
        t = tc * TT + i
        gi = gi_ref[i]                    # (TB, 3Hp)
        # single fused hidden-gate matmul per recurrence step
        gh = jnp.dot(h, whh, preferred_element_type=jnp.float32)  # (TB, 3Hp)

        r = jax.nn.sigmoid(gi[:, :Hp] + gh[:, :Hp])
        z = jax.nn.sigmoid(gi[:, Hp:2 * Hp] + gh[:, Hp:2 * Hp])
        n = jnp.tanh(gi[:, 2 * Hp:] + r * (gh[:, 2 * Hp:] + bhn))
        h_new = (1.0 - z) * n + z * h

        # freeze each row's hidden state at its last valid timestep
        sel_new = jnp.where(lens_m1 == t, h_new, sel)
        return h_new, sel_new

    h, sel = lax.fori_loop(0, TT, step, (h_ref[...], sel_ref[...]), unroll=True)
    h_ref[...] = h
    sel_ref[...] = sel

    @pl.when(tc == pl.num_programs(1) - 1)
    def _finalize():
        out_ref[...] = (jnp.dot(sel, wout_ref[...],
                                preferred_element_type=jnp.float32)
                        + bout_ref[...]).astype(out_ref.dtype)


# ---------------------------------------------------------------------------
# Parameter fusion / padding (zero padding keeps padded lanes exactly zero)
# ---------------------------------------------------------------------------
def prepare_kernel_params(p):
    E, H = p["w_ir"].shape
    O = p["w_out"].shape[1]
    Hp = _round_up(H, 128)
    Op = _round_up(O, 128)

    def pad2(a, r, c):
        return jnp.pad(a, ((0, r - a.shape[0]), (0, c - a.shape[1])))

    # Fused input weights/biases: b_ir+b_hr and b_iz+b_hz fold into the input
    # gates; b_in folds in too; b_hn must stay separate (multiplied by r).
    w_i3 = jnp.concatenate([pad2(p["w_ir"], E, Hp),
                            pad2(p["w_iz"], E, Hp),
                            pad2(p["w_in"], E, Hp)], axis=1)            # (E, 3Hp)
    b_i3 = jnp.concatenate([pad2(p["b_ir"] + p["b_hr"], 1, Hp),
                            pad2(p["b_iz"] + p["b_hz"], 1, Hp),
                            pad2(p["b_in"], 1, Hp)], axis=1)            # (1, 3Hp)
    w_h3 = jnp.concatenate([pad2(p["w_hr"], Hp, Hp),
                            pad2(p["w_hz"], Hp, Hp),
                            pad2(p["w_hn"], Hp, Hp)], axis=1)           # (Hp, 3Hp)
    return {
        "w_i3": w_i3, "b_i3": b_i3, "w_h3": w_h3,
        "b_hn": pad2(p["b_hn"], 1, Hp),
        "w_out": pad2(p["w_out"], Hp, Op),
        "b_out": pad2(p["b_out"], 1, Op),
        "H": H, "Hp": Hp, "O": O, "Op": Op,
    }


# ---------------------------------------------------------------------------
# Forward wrapper
# ---------------------------------------------------------------------------
def code_emb_forward(x, lengths, params, kernel_params=None, time_chunk=8):
    if kernel_params is None:
        kernel_params = prepare_kernel_params(params)
    kp = kernel_params
    Hp, Op, O = kp["Hp"], kp["Op"], kp["O"]

    B, T = x.shape
    # batch tiling: sublane-multiple rows; multiple blocks -> megacore parallel
    if B <= 128:
        Bp = _round_up(B, 8)
        TB = Bp
    else:
        Bp = _round_up(B, 128)
        TB = 128
    nB = Bp // TB

    TT = min(time_chunk, _round_up(T, 8))
    Tp = _round_up(T, TT)
    n_chunks = Tp // TT

    # pad batch (token 0 == padding_idx, length 0 -> never selected) and time
    x_pad = jnp.pad(x.astype(jnp.int32), ((0, Bp - B), (0, Tp - T)))
    lens = jnp.pad(lengths.reshape(-1).astype(jnp.int32), (0, Bp - B))
    lens = lens.reshape(Bp, 1)

    # fused embedding gather (already time-major, no extra transpose pass)
    emb_t = jnp.take(params["embedding"], x_pad.T, axis=0)              # (Tp, Bp, E)
    E = emb_t.shape[-1]
    # hoisted input projection: ONE big matmul for all timesteps
    gi = (emb_t.reshape(Tp * Bp, E).astype(jnp.float32) @ kp["w_i3"]
          + kp["b_i3"]).reshape(Tp, Bp, 3 * Hp)
    # TODO(synk): on v6e/v7x, cast emb/weights to bf16 for the MXU matmuls
    # (keep preferred_element_type=f32 and gate elementwise math in f32).

    cost = pl.CostEstimate(
        flops=int(2 * Tp * Bp * Hp * 3 * Hp + 2 * Bp * Hp * Op),
        transcendentals=int(3 * Tp * Bp * Hp),
        bytes_accessed=int(4 * (gi.size + kp["w_h3"].size + kp["w_out"].size
                                + Bp * Op)),
    )

    out_pad = pl.pallas_call(
        gru_codeemb_kernel,
        out_shape=jax.ShapeDtypeStruct((Bp, Op), jnp.float32),
        grid_spec=pltpu.PrefetchScalarGridSpec(
            num_scalar_prefetch=0,
            grid=(nB, n_chunks),
            in_specs=[
                pl.BlockSpec((TB, 1), lambda b, c: (b, 0)),             # lens
                pl.BlockSpec((TT, TB, 3 * Hp), lambda b, c: (c, b, 0)),  # gi stream
                pl.BlockSpec((Hp, 3 * Hp), lambda b, c: (0, 0)),        # W_h fused
                pl.BlockSpec((1, Hp), lambda b, c: (0, 0)),             # b_hn
                pl.BlockSpec((Hp, Op), lambda b, c: (0, 0)),            # W_out
                pl.BlockSpec((1, Op), lambda b, c: (0, 0)),             # b_out
            ],
            out_specs=pl.BlockSpec((TB, Op), lambda b, c: (b, 0)),
            scratch_shapes=[pltpu.VMEM((TB, Hp), jnp.float32),          # h
                            pltpu.VMEM((TB, Hp), jnp.float32)],         # sel
        ),
        compiler_params=pltpu.CompilerParams(
            dimension_semantics=("parallel", "arbitrary"),
            vmem_limit_bytes=32 * 1024 * 1024,
        ),
        cost_estimate=cost,
    )(lens, gi, kp["w_h3"], kp["b_hn"], kp["w_out"], kp["b_out"])

    return out_pad[:B, :O]


# ---------------------------------------------------------------------------
# Parameter init (PyTorch-like) and pure-JAX reference
# ---------------------------------------------------------------------------
def init_params(key, vocab_size, embedding_dim, hidden_dim, output_size):
    ks = jax.random.split(key, 15)
    scale = 1.0 / jnp.sqrt(hidden_dim)

    emb = jax.random.normal(ks[0], (vocab_size, embedding_dim), jnp.float32)
    emb = emb.at[0].set(0.0)  # padding_idx = 0

    def u(k, shape):
        return jax.random.uniform(k, shape, jnp.float32, -scale, scale)

    return {
        "embedding": emb,
        "w_ir": u(ks[1], (embedding_dim, hidden_dim)),
        "w_iz": u(ks[2], (embedding_dim, hidden_dim)),
        "w_in": u(ks[3], (embedding_dim, hidden_dim)),
        "w_hr": u(ks[4], (hidden_dim, hidden_dim)),
        "w_hz": u(ks[5], (hidden_dim, hidden_dim)),
        "w_hn": u(ks[6], (hidden_dim, hidden_dim)),
        "b_ir": u(ks[7], (1, hidden_dim)),
        "b_iz": u(ks[8], (1, hidden_dim)),
        "b_in": u(ks[9], (1, hidden_dim)),
        "b_hr": u(ks[10], (1, hidden_dim)),
        "b_hz": u(ks[11], (1, hidden_dim)),
        "b_hn": u(ks[12], (1, hidden_dim)),
        "w_out": u(ks[13], (hidden_dim, output_size)),
        "b_out": jnp.zeros((1, output_size), jnp.float32),
    }


def reference_forward(x, lengths, p):
    """Pure-JAX reference replicating the PyTorch module's forward semantics."""
    emb = jnp.take(p["embedding"], x.astype(jnp.int32), axis=0)  # (B, T, E)
    B, T, _ = emb.shape
    H = p["w_hr"].shape[0]
    lens = lengths.reshape(-1).astype(jnp.int32)

    def step(h, x_t):
        r = jax.nn.sigmoid(x_t @ p["w_ir"] + p["b_ir"] + h @ p["w_hr"] + p["b_hr"])
        z = jax.nn.sigmoid(x_t @ p["w_iz"] + p["b_iz"] + h @ p["w_hz"] + p["b_hz"])
        n = jnp.tanh(x_t @ p["w_in"] + p["b_in"] + r * (h @ p["w_hn"] + p["b_hn"]))
        h_new = (1.0 - z) * n + z * h
        return h_new, h_new

    h0 = jnp.zeros((B, H), jnp.float32)
    _, hs = lax.scan(step, h0, jnp.transpose(emb, (1, 0, 2)))    # (T, B, H)
    hs = jnp.transpose(hs, (1, 0, 2))                            # (B, T, H)
    sel = hs[jnp.arange(B), lens - 1, :]                         # (B, H)
    return sel @ p["w_out"] + p["b_out"]


if __name__ == "__main__":
    # Small shapes consistent with the module's forward.
    B, T = 2, 8
    vocab_size = 20
    embedding_dim = 16
    hidden_dim = 32
    output_size = 4

    key = jax.random.PRNGKey(0)
    k_param, k_tok = jax.random.split(key)

    params = init_params(k_param, vocab_size, embedding_dim, hidden_dim, output_size)

    lengths = jnp.array([[8], [5]], dtype=jnp.int32)             # (B, 1) like the module input
    tokens = jax.random.randint(k_tok, (B, T), 1, vocab_size).astype(jnp.int32)
    # zero out padded positions (token id 0 == padding_idx)
    t_idx = jnp.arange(T)[None, :]
    tokens = jnp.where(t_idx < lengths, tokens, 0)

    out = code_emb_forward(tokens, lengths, params)
    out = jax.block_until_ready(out)

    ref = reference_forward(tokens, lengths, params)
    assert out.shape == (B, output_size)
    assert jnp.allclose(out, ref, atol=1e-4, rtol=1e-4), (out, ref)

    print("KERNEL_OK")
</pallas_src>

<mosaic_0001>
module attributes {stable_mosaic.version = 11 : i64} {
  func.func @gru_codeemb_kernel(%arg0: i32, %arg1: i32, %arg2: memref<8x1xi32, #tpu.memory_space<vmem>>, %arg3: memref<8x8x384xf32, #tpu.memory_space<vmem>>, %arg4: memref<128x384xf32, #tpu.memory_space<vmem>>, %arg5: memref<1x128xf32, #tpu.memory_space<vmem>>, %arg6: memref<128x128xf32, #tpu.memory_space<vmem>>, %arg7: memref<1x128xf32, #tpu.memory_space<vmem>>, %arg8: memref<8x128xf32, #tpu.memory_space<vmem>>, %arg9: memref<8x128xf32, #tpu.memory_space<vmem>>, %arg10: memref<8x128xf32, #tpu.memory_space<vmem>>) attributes {dimension_semantics = [#tpu.dimension_semantics<parallel>, #tpu.dimension_semantics<arbitrary>], iteration_bounds = array<i64: 1, 1>, scalar_prefetch = 0 : i64, scratch_operands = 2 : i64, tpu.core_type = #tpu.core_type<tc>, window_params = [{transform_indices = @transform_0, window_bounds = array<i64: 8, 1>}, {transform_indices = @transform_1, window_bounds = array<i64: 8, 8, 384>}, {pipeline_mode = #tpu.pipeline_mode<synchronous>, transform_indices = @transform_2, window_bounds = array<i64: 128, 384>}, {pipeline_mode = #tpu.pipeline_mode<synchronous>, transform_indices = @transform_3, window_bounds = array<i64: 1, 128>}, {pipeline_mode = #tpu.pipeline_mode<synchronous>, transform_indices = @transform_4, window_bounds = array<i64: 128, 128>}, {pipeline_mode = #tpu.pipeline_mode<synchronous>, transform_indices = @transform_5, window_bounds = array<i64: 1, 128>}, {transform_indices = @transform_6, window_bounds = array<i64: 8, 128>}]} {
    %c0_i32 = arith.constant 0 : i32
    %0 = arith.cmpi eq, %arg1, %c0_i32 : i32
    %1 = arith.extui %0 : i1 to i32
    %c0_i32_0 = arith.constant 0 : i32
    %2 = arith.cmpi ne, %1, %c0_i32_0 : i32
    scf.if %2 {
      %cst_73 = arith.constant 0.000000e+00 : f32
      %327 = vector.broadcast %cst_73 : f32 to vector<8x128xf32>
      %c0_74 = arith.constant 0 : index
      %c0_75 = arith.constant 0 : index
      %328 = vector.load %arg9[%c0_74, %c0_75] : memref<8x128xf32, #tpu.memory_space<vmem>>, vector<8x128xf32>
      tpu.vector_store %arg9[%c0_74, %c0_75], %327 {strides = array<i32>} : memref<8x128xf32, #tpu.memory_space<vmem>>, vector<8x128xf32>,
      %cst_76 = arith.constant 0.000000e+00 : f32
      %329 = vector.broadcast %cst_76 : f32 to vector<8x128xf32>
      %c0_77 = arith.constant 0 : index
      %c0_78 = arith.constant 0 : index
      %330 = vector.load %arg10[%c0_77, %c0_78] : memref<8x128xf32, #tpu.memory_space<vmem>>, vector<8x128xf32>
      tpu.vector_store %arg10[%c0_77, %c0_78], %329 {strides = array<i32>} : memref<8x128xf32, #tpu.memory_space<vmem>>, vector<8x128xf32>,
    } else {
    }
    %c0 = arith.constant 0 : index
    %c0_1 = arith.constant 0 : index
    %3 = vector.load %arg2[%c0, %c0_1] : memref<8x1xi32, #tpu.memory_space<vmem>>, vector<8x1xi32>
    %c1_i32 = arith.constant 1 : i32
    %4 = vector.broadcast %c1_i32 : i32 to vector<8x1xi32>
    %5 = arith.subi %3, %4 : vector<8x1xi32>
    %c0_2 = arith.constant 0 : index
    %c0_3 = arith.constant 0 : index
    %6 = vector.load %arg5[%c0_2, %c0_3] : memref<1x128xf32, #tpu.memory_space<vmem>>, vector<1x128xf32>
    %c0_4 = arith.constant 0 : index
    %c0_5 = arith.constant 0 : index
    %7 = vector.load %arg4[%c0_4, %c0_5] : memref<128x384xf32, #tpu.memory_space<vmem>>, vector<128x384xf32>
    %c0_6 = arith.constant 0 : index
    %c0_7 = arith.constant 0 : index
    %8 = vector.load %arg9[%c0_6, %c0_7] : memref<8x128xf32, #tpu.memory_space<vmem>>, vector<8x128xf32>
    %c0_8 = arith.constant 0 : index
    %c0_9 = arith.constant 0 : index
    %9 = vector.load %arg10[%c0_8, %c0_9] : memref<8x128xf32, #tpu.memory_space<vmem>>, vector<8x128xf32>
    %c0_i32_10 = arith.constant 0 : i32
    %c8_i32 = arith.constant 8 : i32
    %10 = arith.muli %arg1, %c8_i32 : i32
    %11 = arith.addi %10, %c0_i32_10 : i32
    %12 = arith.index_cast %c0_i32_10 : i32 to index
    %c0_11 = arith.constant 0 : index
    %c0_12 = arith.constant 0 : index
    %13 = vector.load %arg3[%12, %c0_11, %c0_12] : memref<8x8x384xf32, #tpu.memory_space<vmem>>, vector<1x8x384xf32>
    %14 = vector.shape_cast %13 : vector<1x8x384xf32> to vector<8x384xf32>
    %cst = arith.constant dense<0.000000e+00> : vector<8x384xf32>
    %15 = tpu.matmul %8, %7, %cst {dimension_numbers = #tpu.dot_dimension_numbers<[1], [0], [0], [1], [0, 0, 1, 1], [], []>} : vector<8x128xf32>, vector<128x384xf32>, vector<8x384xf32> -> vector<8x384xf32>
    %16 = vector.extract_strided_slice %14 {offsets = [0, 0], sizes = [8, 128], strides = [1, 1]} : vector<8x384xf32> to vector<8x128xf32>
    %17 = vector.extract_strided_slice %15 {offsets = [0, 0], sizes = [8, 128], strides = [1, 1]} : vector<8x384xf32> to vector<8x128xf32>
    %18 = arith.addf %16, %17 : vector<8x128xf32>
    %19 = arith.negf %18 : vector<8x128xf32>
    %20 = math.exp %19 : vector<8x128xf32>
    %cst_13 = arith.constant 1.000000e+00 : f32
    %21 = vector.broadcast %cst_13 : f32 to vector<8x128xf32>
    %22 = arith.addf %21, %20 : vector<8x128xf32>
    %23 = arith.divf %21, %22 : vector<8x128xf32>
    %24 = vector.extract_strided_slice %14 {offsets = [0, 128], sizes = [8, 128], strides = [1, 1]} : vector<8x384xf32> to vector<8x128xf32>
    %25 = vector.extract_strided_slice %15 {offsets = [0, 128], sizes = [8, 128], strides = [1, 1]} : vector<8x384xf32> to vector<8x128xf32>
    %26 = arith.addf %24, %25 : vector<8x128xf32>
    %27 = arith.negf %26 : vector<8x128xf32>
    %28 = math.exp %27 : vector<8x128xf32>
    %cst_14 = arith.constant 1.000000e+00 : f32
    %29 = vector.broadcast %cst_14 : f32 to vector<8x128xf32>
    %30 = arith.addf %29, %28 : vector<8x128xf32>
    %31 = arith.divf %29, %30 : vector<8x128xf32>
    %32 = vector.extract_strided_slice %14 {offsets = [0, 256], sizes = [8, 128], strides = [1, 1]} : vector<8x384xf32> to vector<8x128xf32>
    %33 = vector.extract_strided_slice %15 {offsets = [0, 256], sizes = [8, 128], strides = [1, 1]} : vector<8x384xf32> to vector<8x128xf32>
    %34 = vector.broadcast %6 : vector<1x128xf32> to vector<8x128xf32>
    %35 = arith.addf %33, %34 : vector<8x128xf32>
    %36 = arith.mulf %23, %35 : vector<8x128xf32>
    %37 = arith.addf %32, %36 : vector<8x128xf32>
    %38 = math.tanh %37 : vector<8x128xf32>
    %cst_15 = arith.constant 1.000000e+00 : f32
    %39 = vector.broadcast %cst_15 : f32 to vector<8x128xf32>
    %40 = arith.subf %39, %31 : vector<8x128xf32>
    %41 = arith.mulf %40, %38 : vector<8x128xf32>
    %42 = arith.mulf %31, %8 : vector<8x128xf32>
    %43 = arith.addf %41, %42 : vector<8x128xf32>
    %44 = vector.broadcast %11 : i32 to vector<8x1xi32>
    %45 = arith.cmpi eq, %5, %44 : vector<8x1xi32>
    %46 = vector.shape_cast %45 : vector<8x1xi1> to vector<8x1xi1>
    %47 = vector.broadcast %46 : vector<8x1xi1> to vector<8x128xi1>
    %48 = arith.select %47, %43, %9 : vector<8x128xi1>, vector<8x128xf32>
    %c1_i32_16 = arith.constant 1 : i32
    %c8_i32_17 = arith.constant 8 : i32
    %49 = arith.muli %arg1, %c8_i32_17 : i32
    %50 = arith.addi %49, %c1_i32_16 : i32
    %51 = arith.index_cast %c1_i32_16 : i32 to index
    %c0_18 = arith.constant 0 : index
    %c0_19 = arith.constant 0 : index
    %52 = vector.load %arg3[%51, %c0_18, %c0_19] : memref<8x8x384xf32, #tpu.memory_space<vmem>>, vector<1x8x384xf32>
    %53 = vector.shape_cast %52 : vector<1x8x384xf32> to vector<8x384xf32>
    %cst_20 = arith.constant dense<0.000000e+00> : vector<8x384xf32>
    %54 = tpu.matmul %43, %7, %cst_20 {dimension_numbers = #tpu.dot_dimension_numbers<[1], [0], [0], [1], [0, 0, 1, 1], [], []>} : vector<8x128xf32>, vector<128x384xf32>, vector<8x384xf32> -> vector<8x384xf32>
    %55 = vector.extract_strided_slice %53 {offsets = [0, 0], sizes = [8, 128], strides = [1, 1]} : vector<8x384xf32> to vector<8x128xf32>
    %56 = vector.extract_strided_slice %54 {offsets = [0, 0], sizes = [8, 128], strides = [1, 1]} : vector<8x384xf32> to vector<8x128xf32>
    %57 = arith.addf %55, %56 : vector<8x128xf32>
    %58 = arith.negf %57 : vector<8x128xf32>
    %59 = math.exp %58 : vector<8x128xf32>
    %cst_21 = arith.constant 1.000000e+00 : f32
    %60 = vector.broadcast %cst_21 : f32 to vector<8x128xf32>
    %61 = arith.addf %60, %59 : vector<8x128xf32>
    %62 = arith.divf %60, %61 : vector<8x128xf32>
    %63 = vector.extract_strided_slice %53 {offsets = [0, 128], sizes = [8, 128], strides = [1, 1]} : vector<8x384xf32> to vector<8x128xf32>
    %64 = vector.extract_strided_slice %54 {offsets = [0, 128], sizes = [8, 128], strides = [1, 1]} : vector<8x384xf32> to vector<8x128xf32>
    %65 = arith.addf %63, %64 : vector<8x128xf32>
    %66 = arith.negf %65 : vector<8x128xf32>
    %67 = math.exp %66 : vector<8x128xf32>
    %cst_22 = arith.constant 1.000000e+00 : f32
    %68 = vector.broadcast %cst_22 : f32 to vector<8x128xf32>
    %69 = arith.addf %68, %67 : vector<8x128xf32>
    %70 = arith.divf %68, %69 : vector<8x128xf32>
    %71 = vector.extract_strided_slice %53 {offsets = [0, 256], sizes = [8, 128], strides = [1, 1]} : vector<8x384xf32> to vector<8x128xf32>
    %72 = vector.extract_strided_slice %54 {offsets = [0, 256], sizes = [8, 128], strides = [1, 1]} : vector<8x384xf32> to vector<8x128xf32>
    %73 = vector.broadcast %6 : vector<1x128xf32> to vector<8x128xf32>
    %74 = arith.addf %72, %73 : vector<8x128xf32>
    %75 = arith.mulf %62, %74 : vector<8x128xf32>
    %76 = arith.addf %71, %75 : vector<8x128xf32>
    %77 = math.tanh %76 : vector<8x128xf32>
    %cst_23 = arith.constant 1.000000e+00 : f32
    %78 = vector.broadcast %cst_23 : f32 to vector<8x128xf32>
    %79 = arith.subf %78, %70 : vector<8x128xf32>
    %80 = arith.mulf %79, %77 : vector<8x128xf32>
    %81 = arith.mulf %70, %43 : vector<8x128xf32>
    %82 = arith.addf %80, %81 : vector<8x128xf32>
    %83 = vector.broadcast %50 : i32 to vector<8x1xi32>
    %84 = arith.cmpi eq, %5, %83 : vector<8x1xi32>
    %85 = vector.shape_cast %84 : vector<8x1xi1> to vector<8x1xi1>
    %86 = vector.broadcast %85 : vector<8x1xi1> to vector<8x128xi1>
    %87 = arith.select %86, %82, %48 : vector<8x128xi1>, vector<8x128xf32>
    %c2_i32 = arith.constant 2 : i32
    %c8_i32_24 = arith.constant 8 : i32
    %88 = arith.muli %arg1, %c8_i32_24 : i32
    %89 = arith.addi %88, %c2_i32 : i32
    %90 = arith.index_cast %c2_i32 : i32 to index
    %c0_25 = arith.constant 0 : index
    %c0_26 = arith.constant 0 : index
    %91 = vector.load %arg3[%90, %c0_25, %c0_26] : memref<8x8x384xf32, #tpu.memory_space<vmem>>, vector<1x8x384xf32>
    %92 = vector.shape_cast %91 : vector<1x8x384xf32> to vector<8x384xf32>
    %cst_27 = arith.constant dense<0.000000e+00> : vector<8x384xf32>
    %93 = tpu.matmul %82, %7, %cst_27 {dimension_numbers = #tpu.dot_dimension_numbers<[1], [0], [0], [1], [0, 0, 1, 1], [], []>} : vector<8x128xf32>, vector<128x384xf32>, vector<8x384xf32> -> vector<8x384xf32>
    %94 = vector.extract_strided_slice %92 {offsets = [0, 0], sizes = [8, 128], strides = [1, 1]} : vector<8x384xf32> to vector<8x128xf32>
    %95 = vector.extract_strided_slice %93 {offsets = [0, 0], sizes = [8, 128], strides = [1, 1]} : vector<8x384xf32> to vector<8x128xf32>
    %96 = arith.addf %94, %95 : vector<8x128xf32>
    %97 = arith.negf %96 : vector<8x128xf32>
    %98 = math.exp %97 : vector<8x128xf32>
    %cst_28 = arith.constant 1.000000e+00 : f32
    %99 = vector.broadcast %cst_28 : f32 to vector<8x128xf32>
    %100 = arith.addf %99, %98 : vector<8x128xf32>
    %101 = arith.divf %99, %100 : vector<8x128xf32>
    %102 = vector.extract_strided_slice %92 {offsets = [0, 128], sizes = [8, 128], strides = [1, 1]} : vector<8x384xf32> to vector<8x128xf32>
    %103 = vector.extract_strided_slice %93 {offsets = [0, 128], sizes = [8, 128], strides = [1, 1]} : vector<8x384xf32> to vector<8x128xf32>
    %104 = arith.addf %102, %103 : vector<8x128xf32>
    %105 = arith.negf %104 : vector<8x128xf32>
    %106 = math.exp %105 : vector<8x128xf32>
    %cst_29 = arith.constant 1.000000e+00 : f32
    %107 = vector.broadcast %cst_29 : f32 to vector<8x128xf32>
    %108 = arith.addf %107, %106 : vector<8x128xf32>
    %109 = arith.divf %107, %108 : vector<8x128xf32>
    %110 = vector.extract_strided_slice %92 {offsets = [0, 256], sizes = [8, 128], strides = [1, 1]} : vector<8x384xf32> to vector<8x128xf32>
    %111 = vector.extract_strided_slice %93 {offsets = [0, 256], sizes = [8, 128], strides = [1, 1]} : vector<8x384xf32> to vector<8x128xf32>
    %112 = vector.broadcast %6 : vector<1x128xf32> to vector<8x128xf32>
    %113 = arith.addf %111, %112 : vector<8x128xf32>
    %114 = arith.mulf %101, %113 : vector<8x128xf32>
    %115 = arith.addf %110, %114 : vector<8x128xf32>
    %116 = math.tanh %115 : vector<8x128xf32>
    %cst_30 = arith.constant 1.000000e+00 : f32
    %117 = vector.broadcast %cst_30 : f32 to vector<8x128xf32>
    %118 = arith.subf %117, %109 : vector<8x128xf32>
    %119 = arith.mulf %118, %116 : vector<8x128xf32>
    %120 = arith.mulf %109, %82 : vector<8x128xf32>
    %121 = arith.addf %119, %120 : vector<8x128xf32>
    %122 = vector.broadcast %89 : i32 to vector<8x1xi32>
    %123 = arith.cmpi eq, %5, %122 : vector<8x1xi32>
    %124 = vector.shape_cast %123 : vector<8x1xi1> to vector<8x1xi1>
    %125 = vector.broadcast %124 : vector<8x1xi1> to vector<8x128xi1>
    %126 = arith.select %125, %121, %87 : vector<8x128xi1>, vector<8x128xf32>
    %c3_i32 = arith.constant 3 : i32
    %c8_i32_31 = arith.constant 8 : i32
    %127 = arith.muli %arg1, %c8_i32_31 : i32
    %128 = arith.addi %127, %c3_i32 : i32
    %129 = arith.index_cast %c3_i32 : i32 to index
    %c0_32 = arith.constant 0 : index
    %c0_33 = arith.constant 0 : index
    %130 = vector.load %arg3[%129, %c0_32, %c0_33] : memref<8x8x384xf32, #tpu.memory_space<vmem>>, vector<1x8x384xf32>
    %131 = vector.shape_cast %130 : vector<1x8x384xf32> to vector<8x384xf32>
    %cst_34 = arith.constant dense<0.000000e+00> : vector<8x384xf32>
    %132 = tpu.matmul %121, %7, %cst_34 {dimension_numbers = #tpu.dot_dimension_numbers<[1], [0], [0], [1], [0, 0, 1, 1], [], []>} : vector<8x128xf32>, vector<128x384xf32>, vector<8x384xf32> -> vector<8x384xf32>
    %133 = vector.extract_strided_slice %131 {offsets = [0, 0], sizes = [8, 128], strides = [1, 1]} : vector<8x384xf32> to vector<8x128xf32>
    %134 = vector.extract_strided_slice %132 {offsets = [0, 0], sizes = [8, 128], strides = [1, 1]} : vector<8x384xf32> to vector<8x128xf32>
    %135 = arith.addf %133, %134 : vector<8x128xf32>
    %136 = arith.negf %135 : vector<8x128xf32>
    %137 = math.exp %136 : vector<8x128xf32>
    %cst_35 = arith.constant 1.000000e+00 : f32
    %138 = vector.broadcast %cst_35 : f32 to vector<8x128xf32>
    %139 = arith.addf %138, %137 : vector<8x128xf32>
    %140 = arith.divf %138, %139 : vector<8x128xf32>
    %141 = vector.extract_strided_slice %131 {offsets = [0, 128], sizes = [8, 128], strides = [1, 1]} : vector<8x384xf32> to vector<8x128xf32>
    %142 = vector.extract_strided_slice %132 {offsets = [0, 128], sizes = [8, 128], strides = [1, 1]} : vector<8x384xf32> to vector<8x128xf32>
    %143 = arith.addf %141, %142 : vector<8x128xf32>
    %144 = arith.negf %143 : vector<8x128xf32>
    %145 = math.exp %144 : vector<8x128xf32>
    %cst_36 = arith.constant 1.000000e+00 : f32
    %146 = vector.broadcast %cst_36 : f32 to vector<8x128xf32>
    %147 = arith.addf %146, %145 : vector<8x128xf32>
    %148 = arith.divf %146, %147 : vector<8x128xf32>
    %149 = vector.extract_strided_slice %131 {offsets = [0, 256], sizes = [8, 128], strides = [1, 1]} : vector<8x384xf32> to vector<8x128xf32>
    %150 = vector.extract_strided_slice %132 {offsets = [0, 256], sizes = [8, 128], strides = [1, 1]} : vector<8x384xf32> to vector<8x128xf32>
    %151 = vector.broadcast %6 : vector<1x128xf32> to vector<8x128xf32>
    %152 = arith.addf %150, %151 : vector<8x128xf32>
    %153 = arith.mulf %140, %152 : vector<8x128xf32>
    %154 = arith.addf %149, %153 : vector<8x128xf32>
    %155 = math.tanh %154 : vector<8x128xf32>
    %cst_37 = arith.constant 1.000000e+00 : f32
    %156 = vector.broadcast %cst_37 : f32 to vector<8x128xf32>
    %157 = arith.subf %156, %148 : vector<8x128xf32>
    %158 = arith.mulf %157, %155 : vector<8x128xf32>
    %159 = arith.mulf %148, %121 : vector<8x128xf32>
    %160 = arith.addf %158, %159 : vector<8x128xf32>
    %161 = vector.broadcast %128 : i32 to vector<8x1xi32>
    %162 = arith.cmpi eq, %5, %161 : vector<8x1xi32>
    %163 = vector.shape_cast %162 : vector<8x1xi1> to vector<8x1xi1>
    %164 = vector.broadcast %163 : vector<8x1xi1> to vector<8x128xi1>
    %165 = arith.select %164, %160, %126 : vector<8x128xi1>, vector<8x128xf32>
    %c4_i32 = arith.constant 4 : i32
    %c8_i32_38 = arith.constant 8 : i32
    %166 = arith.muli %arg1, %c8_i32_38 : i32
    %167 = arith.addi %166, %c4_i32 : i32
    %168 = arith.index_cast %c4_i32 : i32 to index
    %c0_39 = arith.constant 0 : index
    %c0_40 = arith.constant 0 : index
    %169 = vector.load %arg3[%168, %c0_39, %c0_40] : memref<8x8x384xf32, #tpu.memory_space<vmem>>, vector<1x8x384xf32>
    %170 = vector.shape_cast %169 : vector<1x8x384xf32> to vector<8x384xf32>
    %cst_41 = arith.constant dense<0.000000e+00> : vector<8x384xf32>
    %171 = tpu.matmul %160, %7, %cst_41 {dimension_numbers = #tpu.dot_dimension_numbers<[1], [0], [0], [1], [0, 0, 1, 1], [], []>} : vector<8x128xf32>, vector<128x384xf32>, vector<8x384xf32> -> vector<8x384xf32>
    %172 = vector.extract_strided_slice %170 {offsets = [0, 0], sizes = [8, 128], strides = [1, 1]} : vector<8x384xf32> to vector<8x128xf32>
    %173 = vector.extract_strided_slice %171 {offsets = [0, 0], sizes = [8, 128], strides = [1, 1]} : vector<8x384xf32> to vector<8x128xf32>
    %174 = arith.addf %172, %173 : vector<8x128xf32>
    %175 = arith.negf %174 : vector<8x128xf32>
    %176 = math.exp %175 : vector<8x128xf32>
    %cst_42 = arith.constant 1.000000e+00 : f32
    %177 = vector.broadcast %cst_42 : f32 to vector<8x128xf32>
    %178 = arith.addf %177, %176 : vector<8x128xf32>
    %179 = arith.divf %177, %178 : vector<8x128xf32>
    %180 = vector.extract_strided_slice %170 {offsets = [0, 128], sizes = [8, 128], strides = [1, 1]} : vector<8x384xf32> to vector<8x128xf32>
    %181 = vector.extract_strided_slice %171 {offsets = [0, 128], sizes = [8, 128], strides = [1, 1]} : vector<8x384xf32> to vector<8x128xf32>
    %182 = arith.addf %180, %181 : vector<8x128xf32>
    %183 = arith.negf %182 : vector<8x128xf32>
    %184 = math.exp %183 : vector<8x128xf32>
    %cst_43 = arith.constant 1.000000e+00 : f32
    %185 = vector.broadcast %cst_43 : f32 to vector<8x128xf32>
    %186 = arith.addf %185, %184 : vector<8x128xf32>
    %187 = arith.divf %185, %186 : vector<8x128xf32>
    %188 = vector.extract_strided_slice %170 {offsets = [0, 256], sizes = [8, 128], strides = [1, 1]} : vector<8x384xf32> to vector<8x128xf32>
    %189 = vector.extract_strided_slice %171 {offsets = [0, 256], sizes = [8, 128], strides = [1, 1]} : vector<8x384xf32> to vector<8x128xf32>
    %190 = vector.broadcast %6 : vector<1x128xf32> to vector<8x128xf32>
    %191 = arith.addf %189, %190 : vector<8x128xf32>
    %192 = arith.mulf %179, %191 : vector<8x128xf32>
    %193 = arith.addf %188, %192 : vector<8x128xf32>
    %194 = math.tanh %193 : vector<8x128xf32>
    %cst_44 = arith.constant 1.000000e+00 : f32
    %195 = vector.broadcast %cst_44 : f32 to vector<8x128xf32>
    %196 = arith.subf %195, %187 : vector<8x128xf32>
    %197 = arith.mulf %196, %194 : vector<8x128xf32>
    %198 = arith.mulf %187, %160 : vector<8x128xf32>
    %199 = arith.addf %197, %198 : vector<8x128xf32>
    %200 = vector.broadcast %167 : i32 to vector<8x1xi32>
    %201 = arith.cmpi eq, %5, %200 : vector<8x1xi32>
    %202 = vector.shape_cast %201 : vector<8x1xi1> to vector<8x1xi1>
    %203 = vector.broadcast %202 : vector<8x1xi1> to vector<8x128xi1>
    %204 = arith.select %203, %199, %165 : vector<8x128xi1>, vector<8x128xf32>
    %c5_i32 = arith.constant 5 : i32
    %c8_i32_45 = arith.constant 8 : i32
    %205 = arith.muli %arg1, %c8_i32_45 : i32
    %206 = arith.addi %205, %c5_i32 : i32
    %207 = arith.index_cast %c5_i32 : i32 to index
    %c0_46 = arith.constant 0 : index
    %c0_47 = arith.constant 0 : index
    %208 = vector.load %arg3[%207, %c0_46, %c0_47] : memref<8x8x384xf32, #tpu.memory_space<vmem>>, vector<1x8x384xf32>
    %209 = vector.shape_cast %208 : vector<1x8x384xf32> to vector<8x384xf32>
    %cst_48 = arith.constant dense<0.000000e+00> : vector<8x384xf32>
    %210 = tpu.matmul %199, %7, %cst_48 {dimension_numbers = #tpu.dot_dimension_numbers<[1], [0], [0], [1], [0, 0, 1, 1], [], []>} : vector<8x128xf32>, vector<128x384xf32>, vector<8x384xf32> -> vector<8x384xf32>
    %211 = vector.extract_strided_slice %209 {offsets = [0, 0], sizes = [8, 128], strides = [1, 1]} : vector<8x384xf32> to vector<8x128xf32>
    %212 = vector.extract_strided_slice %210 {offsets = [0, 0], sizes = [8, 128], strides = [1, 1]} : vector<8x384xf32> to vector<8x128xf32>
    %213 = arith.addf %211, %212 : vector<8x128xf32>
    %214 = arith.negf %213 : vector<8x128xf32>
    %215 = math.exp %214 : vector<8x128xf32>
    %cst_49 = arith.constant 1.000000e+00 : f32
    %216 = vector.broadcast %cst_49 : f32 to vector<8x128xf32>
    %217 = arith.addf %216, %215 : vector<8x128xf32>
    %218 = arith.divf %216, %217 : vector<8x128xf32>
    %219 = vector.extract_strided_slice %209 {offsets = [0, 128], sizes = [8, 128], strides = [1, 1]} : vector<8x384xf32> to vector<8x128xf32>
    %220 = vector.extract_strided_slice %210 {offsets = [0, 128], sizes = [8, 128], strides = [1, 1]} : vector<8x384xf32> to vector<8x128xf32>
    %221 = arith.addf %219, %220 : vector<8x128xf32>
    %222 = arith.negf %221 : vector<8x128xf32>
    %223 = math.exp %222 : vector<8x128xf32>
    %cst_50 = arith.constant 1.000000e+00 : f32
    %224 = vector.broadcast %cst_50 : f32 to vector<8x128xf32>
    %225 = arith.addf %224, %223 : vector<8x128xf32>
    %226 = arith.divf %224, %225 : vector<8x128xf32>
    %227 = vector.extract_strided_slice %209 {offsets = [0, 256], sizes = [8, 128], strides = [1, 1]} : vector<8x384xf32> to vector<8x128xf32>
    %228 = vector.extract_strided_slice %210 {offsets = [0, 256], sizes = [8, 128], strides = [1, 1]} : vector<8x384xf32> to vector<8x128xf32>
    %229 = vector.broadcast %6 : vector<1x128xf32> to vector<8x128xf32>
    %230 = arith.addf %228, %229 : vector<8x128xf32>
    %231 = arith.mulf %218, %230 : vector<8x128xf32>
    %232 = arith.addf %227, %231 : vector<8x128xf32>
    %233 = math.tanh %232 : vector<8x128xf32>
    %cst_51 = arith.constant 1.000000e+00 : f32
    %234 = vector.broadcast %cst_51 : f32 to vector<8x128xf32>
    %235 = arith.subf %234, %226 : vector<8x128xf32>
    %236 = arith.mulf %235, %233 : vector<8x128xf32>
    %237 = arith.mulf %226, %199 : vector<8x128xf32>
    %238 = arith.addf %236, %237 : vector<8x128xf32>
    %239 = vector.broadcast %206 : i32 to vector<8x1xi32>
    %240 = arith.cmpi eq, %5, %239 : vector<8x1xi32>
    %241 = vector.shape_cast %240 : vector<8x1xi1> to vector<8x1xi1>
    %242 = vector.broadcast %241 : vector<8x1xi1> to vector<8x128xi1>
    %243 = arith.select %242, %238, %204 : vector<8x128xi1>, vector<8x128xf32>
    %c6_i32 = arith.constant 6 : i32
    %c8_i32_52 = arith.constant 8 : i32
    %244 = arith.muli %arg1, %c8_i32_52 : i32
    %245 = arith.addi %244, %c6_i32 : i32
    %246 = arith.index_cast %c6_i32 : i32 to index
    %c0_53 = arith.constant 0 : index
    %c0_54 = arith.constant 0 : index
    %247 = vector.load %arg3[%246, %c0_53, %c0_54] : memref<8x8x384xf32, #tpu.memory_space<vmem>>, vector<1x8x384xf32>
    %248 = vector.shape_cast %247 : vector<1x8x384xf32> to vector<8x384xf32>
    %cst_55 = arith.constant dense<0.000000e+00> : vector<8x384xf32>
    %249 = tpu.matmul %238, %7, %cst_55 {dimension_numbers = #tpu.dot_dimension_numbers<[1], [0], [0], [1], [0, 0, 1, 1], [], []>} : vector<8x128xf32>, vector<128x384xf32>, vector<8x384xf32> -> vector<8x384xf32>
    %250 = vector.extract_strided_slice %248 {offsets = [0, 0], sizes = [8, 128], strides = [1, 1]} : vector<8x384xf32> to vector<8x128xf32>
    %251 = vector.extract_strided_slice %249 {offsets = [0, 0], sizes = [8, 128], strides = [1, 1]} : vector<8x384xf32> to vector<8x128xf32>
    %252 = arith.addf %250, %251 : vector<8x128xf32>
    %253 = arith.negf %252 : vector<8x128xf32>
    %254 = math.exp %253 : vector<8x128xf32>
    %cst_56 = arith.constant 1.000000e+00 : f32
    %255 = vector.broadcast %cst_56 : f32 to vector<8x128xf32>
    %256 = arith.addf %255, %254 : vector<8x128xf32>
    %257 = arith.divf %255, %256 : vector<8x128xf32>
    %258 = vector.extract_strided_slice %248 {offsets = [0, 128], sizes = [8, 128], strides = [1, 1]} : vector<8x384xf32> to vector<8x128xf32>
    %259 = vector.extract_strided_slice %249 {offsets = [0, 128], sizes = [8, 128], strides = [1, 1]} : vector<8x384xf32> to vector<8x128xf32>
    %260 = arith.addf %258, %259 : vector<8x128xf32>
    %261 = arith.negf %260 : vector<8x128xf32>
    %262 = math.exp %261 : vector<8x128xf32>
    %cst_57 = arith.constant 1.000000e+00 : f32
    %263 = vector.broadcast %cst_57 : f32 to vector<8x128xf32>
    %264 = arith.addf %263, %262 : vector<8x128xf32>
    %265 = arith.divf %263, %264 : vector<8x128xf32>
    %266 = vector.extract_strided_slice %248 {offsets = [0, 256], sizes = [8, 128], strides = [1, 1]} : vector<8x384xf32> to vector<8x128xf32>
    %267 = vector.extract_strided_slice %249 {offsets = [0, 256], sizes = [8, 128], strides = [1, 1]} : vector<8x384xf32> to vector<8x128xf32>
    %268 = vector.broadcast %6 : vector<1x128xf32> to vector<8x128xf32>
    %269 = arith.addf %267, %268 : vector<8x128xf32>
    %270 = arith.mulf %257, %269 : vector<8x128xf32>
    %271 = arith.addf %266, %270 : vector<8x128xf32>
    %272 = math.tanh %271 : vector<8x128xf32>
    %cst_58 = arith.constant 1.000000e+00 : f32
    %273 = vector.broadcast %cst_58 : f32 to vector<8x128xf32>
    %274 = arith.subf %273, %265 : vector<8x128xf32>
    %275 = arith.mulf %274, %272 : vector<8x128xf32>
    %276 = arith.mulf %265, %238 : vector<8x128xf32>
    %277 = arith.addf %275, %276 : vector<8x128xf32>
    %278 = vector.broadcast %245 : i32 to vector<8x1xi32>
    %279 = arith.cmpi eq, %5, %278 : vector<8x1xi32>
    %280 = vector.shape_cast %279 : vector<8x1xi1> to vector<8x1xi1>
    %281 = vector.broadcast %280 : vector<8x1xi1> to vector<8x128xi1>
    %282 = arith.select %281, %277, %243 : vector<8x128xi1>, vector<8x128xf32>
    %c7_i32 = arith.constant 7 : i32
    %c8_i32_59 = arith.constant 8 : i32
    %283 = arith.muli %arg1, %c8_i32_59 : i32
    %284 = arith.addi %283, %c7_i32 : i32
    %285 = arith.index_cast %c7_i32 : i32 to index
    %c0_60 = arith.constant 0 : index
    %c0_61 = arith.constant 0 : index
    %286 = vector.load %arg3[%285, %c0_60, %c0_61] : memref<8x8x384xf32, #tpu.memory_space<vmem>>, vector<1x8x384xf32>
    %287 = vector.shape_cast %286 : vector<1x8x384xf32> to vector<8x384xf32>
    %cst_62 = arith.constant dense<0.000000e+00> : vector<8x384xf32>
    %288 = tpu.matmul %277, %7, %cst_62 {dimension_numbers = #tpu.dot_dimension_numbers<[1], [0], [0], [1], [0, 0, 1, 1], [], []>} : vector<8x128xf32>, vector<128x384xf32>, vector<8x384xf32> -> vector<8x384xf32>
    %289 = vector.extract_strided_slice %287 {offsets = [0, 0], sizes = [8, 128], strides = [1, 1]} : vector<8x384xf32> to vector<8x128xf32>
    %290 = vector.extract_strided_slice %288 {offsets = [0, 0], sizes = [8, 128], strides = [1, 1]} : vector<8x384xf32> to vector<8x128xf32>
    %291 = arith.addf %289, %290 : vector<8x128xf32>
    %292 = arith.negf %291 : vector<8x128xf32>
    %293 = math.exp %292 : vector<8x128xf32>
    %cst_63 = arith.constant 1.000000e+00 : f32
    %294 = vector.broadcast %cst_63 : f32 to vector<8x128xf32>
    %295 = arith.addf %294, %293 : vector<8x128xf32>
    %296 = arith.divf %294, %295 : vector<8x128xf32>
    %297 = vector.extract_strided_slice %287 {offsets = [0, 128], sizes = [8, 128], strides = [1, 1]} : vector<8x384xf32> to vector<8x128xf32>
    %298 = vector.extract_strided_slice %288 {offsets = [0, 128], sizes = [8, 128], strides = [1, 1]} : vector<8x384xf32> to vector<8x128xf32>
    %299 = arith.addf %297, %298 : vector<8x128xf32>
    %300 = arith.negf %299 : vector<8x128xf32>
    %301 = math.exp %300 : vector<8x128xf32>
    %cst_64 = arith.constant 1.000000e+00 : f32
    %302 = vector.broadcast %cst_64 : f32 to vector<8x128xf32>
    %303 = arith.addf %302, %301 : vector<8x128xf32>
    %304 = arith.divf %302, %303 : vector<8x128xf32>
    %305 = vector.extract_strided_slice %287 {offsets = [0, 256], sizes = [8, 128], strides = [1, 1]} : vector<8x384xf32> to vector<8x128xf32>
    %306 = vector.extract_strided_slice %288 {offsets = [0, 256], sizes = [8, 128], strides = [1, 1]} : vector<8x384xf32> to vector<8x128xf32>
    %307 = vector.broadcast %6 : vector<1x128xf32> to vector<8x128xf32>
    %308 = arith.addf %306, %307 : vector<8x128xf32>
    %309 = arith.mulf %296, %308 : vector<8x128xf32>
    %310 = arith.addf %305, %309 : vector<8x128xf32>
    %311 = math.tanh %310 : vector<8x128xf32>
    %cst_65 = arith.constant 1.000000e+00 : f32
    %312 = vector.broadcast %cst_65 : f32 to vector<8x128xf32>
    %313 = arith.subf %312, %304 : vector<8x128xf32>
    %314 = arith.mulf %313, %311 : vector<8x128xf32>
    %315 = arith.mulf %304, %277 : vector<8x128xf32>
    %316 = arith.addf %314, %315 : vector<8x128xf32>
    %317 = vector.broadcast %284 : i32 to vector<8x1xi32>
    %318 = arith.cmpi eq, %5, %317 : vector<8x1xi32>
    %319 = vector.shape_cast %318 : vector<8x1xi1> to vector<8x1xi1>
    %320 = vector.broadcast %319 : vector<8x1xi1> to vector<8x128xi1>
    %321 = arith.select %320, %316, %282 : vector<8x128xi1>, vector<8x128xf32>
    %c8_i32_66 = arith.constant 8 : i32
    %c0_67 = arith.constant 0 : index
    %c0_68 = arith.constant 0 : index
    %322 = vector.load %arg9[%c0_67, %c0_68] : memref<8x128xf32, #tpu.memory_space<vmem>>, vector<8x128xf32>
    tpu.vector_store %arg9[%c0_67, %c0_68], %316 {strides = array<i32>} : memref<8x128xf32, #tpu.memory_space<vmem>>, vector<8x128xf32>,
    %c0_69 = arith.constant 0 : index
    %c0_70 = arith.constant 0 : index
    %323 = vector.load %arg10[%c0_69, %c0_70] : memref<8x128xf32, #tpu.memory_space<vmem>>, vector<8x128xf32>
    tpu.vector_store %arg10[%c0_69, %c0_70], %321 {strides = array<i32>} : memref<8x128xf32, #tpu.memory_space<vmem>>, vector<8x128xf32>,
    %c0_i32_71 = arith.constant 0 : i32
    %324 = arith.cmpi eq, %arg1, %c0_i32_71 : i32
    %325 = arith.extui %324 : i1 to i32
    %c0_i32_72 = arith.constant 0 : i32
    %326 = arith.cmpi ne, %325, %c0_i32_72 : i32
    scf.if %326 {
      %c0_73 = arith.constant 0 : index
      %c0_74 = arith.constant 0 : index
      %327 = vector.load %arg6[%c0_73, %c0_74] : memref<128x128xf32, #tpu.memory_space<vmem>>, vector<128x128xf32>
      %cst_75 = arith.constant dense<0.000000e+00> : vector<8x128xf32>
      %328 = tpu.matmul %321, %327, %cst_75 {dimension_numbers = #tpu.dot_dimension_numbers<[1], [0], [0], [1], [0, 0, 1, 1], [], []>} : vector<8x128xf32>, vector<128x128xf32>, vector<8x128xf32> -> vector<8x128xf32>
      %c0_76 = arith.constant 0 : index
      %c0_77 = arith.constant 0 : index
      %329 = vector.load %arg7[%c0_76, %c0_77] : memref<1x128xf32, #tpu.memory_space<vmem>>, vector<1x128xf32>
      %330 = vector.broadcast %329 : vector<1x128xf32> to vector<8x128xf32>
      %331 = arith.addf %328, %330 : vector<8x128xf32>
      %c0_78 = arith.constant 0 : index
      %c0_79 = arith.constant 0 : index
      %332 = vector.load %arg8[%c0_78, %c0_79] : memref<8x128xf32, #tpu.memory_space<vmem>>, vector<8x128xf32>
      tpu.vector_store %arg8[%c0_78, %c0_79], %331 {strides = array<i32>} : memref<8x128xf32, #tpu.memory_space<vmem>>, vector<8x128xf32>,
    } else {
    }
    return
  }
  func.func @transform_0(%arg0: i32, %arg1: i32) -> (i32, i32) {
    %c0_i32 = arith.constant 0 : i32
    %c0_i32_0 = arith.constant 0 : i32
    return %arg0, %c0_i32 : i32, i32
  }
  func.func @transform_1(%arg0: i32, %arg1: i32) -> (i32, i32, i32) {
    %c0_i32 = arith.constant 0 : i32
    %c0_i32_0 = arith.constant 0 : i32
    return %arg1, %arg0, %c0_i32 : i32, i32, i32
  }
  func.func @transform_2(%arg0: i32, %arg1: i32) -> (i32, i32) {
    %c0_i32 = arith.constant 0 : i32
    %c0_i32_0 = arith.constant 0 : i32
    %c0_i32_1 = arith.constant 0 : i32
    return %c0_i32, %c0_i32_0 : i32, i32
  }
  func.func @transform_3(%arg0: i32, %arg1: i32) -> (i32, i32) {
    %c0_i32 = arith.constant 0 : i32
    %c0_i32_0 = arith.constant 0 : i32
    %c0_i32_1 = arith.constant 0 : i32
    return %c0_i32, %c0_i32_0 : i32, i32
  }
  func.func @transform_4(%arg0: i32, %arg1: i32) -> (i32, i32) {
    %c0_i32 = arith.constant 0 : i32
    %c0_i32_0 = arith.constant 0 : i32
    %c0_i32_1 = arith.constant 0 : i32
    return %c0_i32, %c0_i32_0 : i32, i32
  }
  func.func @transform_5(%arg0: i32, %arg1: i32) -> (i32, i32) {
    %c0_i32 = arith.constant 0 : i32
    %c0_i32_0 = arith.constant 0 : i32
    %c0_i32_1 = arith.constant 0 : i32
    return %c0_i32, %c0_i32_0 : i32, i32
  }
  func.func @transform_6(%arg0: i32, %arg1: i32) -> (i32, i32) {
    %c0_i32 = arith.constant 0 : i32
    %c0_i32_0 = arith.constant 0 : i32
    return %arg0, %c0_i32 : i32, i32
  }
}

</mosaic_0001>

<bundles_post_ra>
// kernel: tpu_custom_call.1
= control target key start
LH: loop header
LB: loop body
LE: loop exit
PB: predicated region body
PF: predicated region fallthrough
CT: control target
= control target key end

     0   :  { %11 = vsyncpa [#allocation5], 0  ;;  %s2094_s0 = inlined_call_operand.vmem [shape: s32[8,1], index: 0, kind: input, shape index: {}]   ;;  %s2095_s1 = inlined_call_operand.hbm [shape: f32[8,8,384], index: 1, kind: input, shape index: {}]   ;;  %s2096_s2 = inlined_call_operand.hbm [shape: f32[128,384], index: 2, kind: input, shape index: {}]   ;;  %s2097_s3 = inlined_call_operand.vmem [shape: f32[1,128], index: 3, kind: input, shape index: {}]   ;;  %s2098_s4 = inlined_call_operand.hbm [shape: f32[128,128], index: 4, kind: input, shape index: {}]   ;;  %s2099_s5 = inlined_call_operand.vmem [shape: f32[1,128], index: 5, kind: input, shape index: {}]   ;;  %s2100_s6 = inlined_call_operand.hbm [shape: f32[8,128], index: 6, kind: output, shape index: {}]  }
   0x1   :  { %12 = vsyncpa [#allocation8], 0 }
   0x2   :  { %13 = vsyncpa [#allocation6], 0  ;;  %s33_s23 = sshll.u32 %s2096_s2, 4  ;;  %s1427_s24 = smov [#allocation7]   ;;  %s34_s23 = int_to_ptr.hbm [resolvable:$true] %s33_s23 }
   0x3   :  { %s35_s25 = sshll.u32 %s1427_s24, 4  ;;  %s20_s28 = sshll.u32 %s2095_s1, 4  ;;  %s36_s25 = int_to_ptr.vmem [resolvable:$true] %s35_s25  ;;  %s21_s28 = int_to_ptr.hbm [resolvable:$true] %s20_s28 }
   0x4   :  { %s1428_s29 = smov 384   ;;  %s1429_s30 = smov 24  }
   0x5   :  { %41 = dma.hbm_to_vmem [thread:$0]  %s34_s23, 6144, %s36_s25, [#allocation8], %s1428_s29, %s1428_s29, %s1429_s30  }
   0x6   :  { %s1430_s7 = smov [#allocation4]   ;;  %s48_s11 = sshll.u32 %s2098_s4, 4  ;;  %s49_s11 = int_to_ptr.hbm [resolvable:$true] %s48_s11 }
   0x7   :  { %s22_s8 = sshll.u32 %s1430_s7, 4  ;;  %s1431_s2 = smov [#allocation9]   ;;  %s23_s8 = int_to_ptr.vmem [resolvable:$true] %s22_s8 }
   0x8   :  { %28 = dma.hbm_to_vmem [thread:$0]  %s21_s28, 3072, %s23_s8, [#allocation5], %s1428_s29, %s1428_s29, %s1429_s30  }
   0x9   :  { %s50_s12 = sshll.u32 %s1431_s2, 4  ;;  %s1432_s13 = smov 128   ;;  %s51_s12 = int_to_ptr.vmem [resolvable:$true] %s50_s12 }
   0xa   :  { %s1433_s14 = smov 8  }
   0xb   :  { %56 = dma.hbm_to_vmem [thread:$0]  %s49_s11, 2048, %s51_s12, [#allocation8], %s1432_s13, %s1432_s13, %s1433_s14  }
   0xc   :  { %1421 = dma.done.wait [#allocation5], 3072  }
   0xd   :  { %1422 = vsyncadd [#allocation5], 4294964224 }
   0xe   :  { %1423 = dma.done.wait [#allocation8], 8192  }
   0xf   :  { %1424 = vsyncadd [#allocation8], 4294959104  ;;  %v1481_v0 = vld [vmem:[#allocation7 + $0x168] sm:$0xff]  ;;  %v1483_v1 = vld [vmem:[#allocation7 + $0x170] sm:$0xff]  ;;  %v2105_v19 = vmov 0   ;;  %v1435_v48 = vmov 0.0  }
  0x10   :  { %v1485_v2 = vld [vmem:[#allocation7 + $0x150] sm:$0xff]  ;;  %134 = vmatpush.msra.mxu0 %v1481_v0  ;;  %154 = vmatpush.msra.mxu1 %v1483_v1  ;;  %v1489_v3 = vld [vmem:[#allocation7 + $0x158] sm:$0xff]  ;;  %v1493_v5 = vld [vmem:[#allocation7 + $0x140] sm:$0xff]  ;;  %s1436_s19 = smov [#allocation10]   ;;  %s1153_s23 = sshll.u32 %s2100_s6, 4  ;;  %s1154_s23 = int_to_ptr.hbm [resolvable:$true] %s1153_s23 }
  0x11   :  { %v1491_v4 = vld [vmem:[#allocation7 + $0x138] sm:$0xff]  ;;  %258 = vmatpush.msra.mxu3 %v1481_v0  ;;  %v1498_v6 = vld [vmem:[#allocation7 + $0x120] sm:$0xff]  ;;  %v1500_v7 = vld [vmem:[#allocation7 + $0x128] sm:$0xff]  ;;  %1191 = vset.pattern.permute.xlu0 %v2105_v19  ;;  %s1151_s20 = sshll.u32 %s1436_s19, 4  ;;  %s1152_s20 = int_to_ptr.vmem [resolvable:$true] %s1151_s20 }
  0x12   :  { %135 = vmatpush.msra.mxu0 %v1485_v2  ;;  %155 = vmatpush.msra.mxu1 %v1489_v3  ;;  %v1505_v8 = vld [vmem:[#allocation7 + $0x108] sm:$0xff]  ;;  %v1507_v9 = vld [vmem:[#allocation7 + $0x110] sm:$0xff]  ;;  %v1514_v11 = vld [vmem:[#allocation7 + $0xf8] sm:$0xff] }
  0x13   :  { %259 = vmatpush.msra.mxu3 %v1485_v2  ;;  %v1512_v10 = vld [vmem:[#allocation7 + $0xf0] sm:$0xff]  ;;  %v1516_v12 = vld [vmem:[#allocation7 + $0x178] sm:$0xff]  ;;  %v1521_v13 = vld [vmem:[#allocation7 + $0x160] sm:$0xff]  ;;  %1192 = vset.pattern.permute.xlu1 %v2105_v19 }
  0x14   :  { %136 = vmatpush.msra.mxu0 %v1491_v4  ;;  %156 = vmatpush.msra.mxu1 %v1493_v5  ;;  %v1523_v14 = vld [vmem:[#allocation7 + $0xd8] sm:$0xff]  ;;  %v1525_v15 = vld [vmem:[#allocation7 + $0xe0] sm:$0xff]  ;;  %v1531_v16 = vld [vmem:[#allocation7 + $0x148] sm:$0xff] }
  0x15   :  { %260 = vmatpush.msra.mxu3 %v1491_v4  ;;  %174 = vmatpush.msra.mxu2 %v1516_v12  ;;  %v1533_v17 = vld [vmem:[#allocation7 + $0xc0] sm:$0xff]  ;;  %v1535_v18 = vld [vmem:[#allocation7 + $0xc8] sm:$0xff]  ;;  %v1541_v20 = vld [vmem:[#allocation7 + $0x130] sm:$0xff] }
  0x16   :  { %137 = vmatpush.msra.mxu0 %v1498_v6  ;;  %157 = vmatpush.msra.mxu1 %v1500_v7  ;;  %v1543_v21 = vld [vmem:[#allocation7 + $0xa8] sm:$0xff]  ;;  %v1545_v22 = vld [vmem:[#allocation7 + $0xb0] sm:$0xff]  ;;  %v1553_v24 = vld [vmem:[#allocation7 + $0x118] sm:$0xff] }
  0x17   :  { %261 = vmatpush.msra.mxu3 %v1498_v6  ;;  %175 = vmatpush.msra.mxu2 %v1521_v13  ;;  %v1551_v23 = vld [vmem:[#allocation7 + $0x90] sm:$0xff]  ;;  %v1555_v25 = vld [vmem:[#allocation7 + $0x98] sm:$0xff]  ;;  %v77_v26 = vld [vmem:[%s2094_s0] sm:$0xff] }
  0x18   :  { %138 = vmatpush.msra.mxu0 %v1505_v8  ;;  %158 = vmatpush.msra.mxu1 %v1507_v9  ;;  %v1564_v27 = vld [vmem:[#allocation7 + $0x100] sm:$0xff]  ;;  %v1566_v28 = vadd.s32 4294967295, %v77_v26  ;;  %v1568_v29 = vld [vmem:[#allocation7 + $0x78] sm:$0xff]  ;;  %v1576_v31 = vld [vmem:[#allocation7 + $0xe8] sm:$0xff] }
  0x19   :  { %262 = vmatpush.msra.mxu3 %v1505_v8  ;;  %176 = vmatpush.msra.mxu2 %v1531_v16  ;;  %v1570_v30 = vld [vmem:[#allocation7 + $0x80] sm:$0xff]  ;;  %v1581_v33 = vld [vmem:[#allocation7 + $0x68] sm:$0xff]  ;;  %v1588_v35 = vld [vmem:[#allocation7 + $0xd0] sm:$0xff] }
  0x1a   :  { %139 = vmatpush.msra.mxu0 %v1512_v10  ;;  %159 = vmatpush.msra.mxu1 %v1514_v11  ;;  %2121 = vst [vmem:[#allocation14_spill] sm:$0xff] %v1566_v28  ;;  %vm246_vm0 = vcmp.eq.s32.totalorder %v1566_v28, 0  ;;  %v1579_v32 = vld [vmem:[#allocation7 + $0x60] sm:$0xff]  ;;  %v1590_v36 = vld [vmem:[#allocation7 + $0x48] sm:$0xff]  ;;  %v1592_v37 = vld [vmem:[#allocation7 + $0x50] sm:$0xff]  ;;  %vm367_vm1 = vcmp.eq.s32.totalorder %v1566_v28, 1 }
  0x1b   :  { %263 = vmatpush.msra.mxu3 %v1512_v10  ;;  %177 = vmatpush.msra.mxu2 %v1541_v20  ;;  %v247_v34 = vsel %vm246_vm0, 1, %v2105_v19  ;;  %v1597_v38 = vld [vmem:[#allocation7 + $0xb8] sm:$0xff]  ;;  %v1599_v39 = vld [vmem:[#allocation7 + $0x30] sm:$0xff]  ;;  %v1607_v41 = vld [vmem:[#allocation7 + $0xa0] sm:$0xff] }
  0x1c   :  { %140 = vmatpush.msra.mxu0 %v1523_v14  ;;  %160 = vmatpush.msra.mxu1 %v1525_v15  ;;  %2122 = vst [vmem:[#allocation15_spill] sm:$0xff] %v1599_v39  ;;  %v1601_v40 = vld [vmem:[#allocation7 + $0x38] sm:$0xff]  ;;  %v1611_v43 = vld [vmem:[#allocation7 + $0x20] sm:$0xff]  ;;  %v1617_v44 = vld [vmem:[#allocation7 + $0x88] sm:$0xff] }
  0x1d   :  { %264 = vmatpush.msra.mxu3 %v1523_v14  ;;  %178 = vmatpush.msra.mxu2 %v1553_v24  ;;  %2123 = vst [vmem:[#allocation16_spill] sm:$0xff] %v1601_v40  ;;  %v1609_v42 = vld [vmem:[#allocation7 + $0x18] sm:$0xff]  ;;  %v1619_v45 = vld [vmem:[#allocation7] sm:$0xff]  ;;  %v1621_v46 = vld [vmem:[#allocation7 + $0x8] sm:$0xff] }
  0x1e   :  { %141 = vmatpush.msra.mxu0 %v1533_v17  ;;  %161 = vmatpush.msra.mxu1 %v1535_v18  ;;  %2124 = vst [vmem:[#allocation17_spill] sm:$0xff] %v1609_v42  ;;  %v1628_v47 = vld [vmem:[#allocation7 + $0x70] sm:$0xff]  ;;  %v1633_v49 = vld [vmem:[#allocation7 + $0x58] sm:$0xff]  ;;  %v1637_v50 = vld [vmem:[#allocation7 + $0x40] sm:$0xff] }
  0x1f   :  { %265 = vmatpush.msra.mxu3 %v1533_v17  ;;  %179 = vmatpush.msra.mxu2 %v1564_v27  ;;  %2125 = vst [vmem:[#allocation18_spill] sm:$0xff] %v1611_v43  ;;  %v1643_v51 = vld [vmem:[#allocation7 + $0x28] sm:$0xff]  ;;  %v1649_v52 = vld [vmem:[#allocation7 + $0x10] sm:$0xff]  ;;  %v131_v53 = vld [vmem:[#allocation4] sm:$0xff] }
  0x20   :  { %142 = vmatpush.msra.mxu0 %v1543_v21  ;;  %162 = vmatpush.msra.mxu1 %v1545_v22  ;;  %2126 = vst [vmem:[#allocation19_spill] sm:$0xff] %v1619_v45  ;;  %v132_v54 = vld [vmem:[#allocation4 + $0x8] sm:$0xff] }
  0x21   :  { %266 = vmatpush.msra.mxu3 %v1543_v21  ;;  %180 = vmatpush.msra.mxu2 %v1576_v31  ;;  %2127 = vst [vmem:[#allocation20_spill] sm:$0xff] %v1621_v46 }
  0x22   :  { %143 = vmatpush.msra.mxu0 %v1551_v23  ;;  %163 = vmatpush.msra.mxu1 %v1555_v25  ;;  %2128 = vst [vmem:[#allocation21_spill] sm:$0xff] %v1643_v51 }
  0x23   :  { %249 = vperm.xlu0 %1191, %v247_v34   ;;  %181 = vmatpush.msra.mxu2 %v1588_v35  ;;  %2129 = vst [vmem:[#allocation22_spill] sm:$0xff] %v1649_v52  ;;  %v368_v34 = vsel %vm367_vm1, 1, %v2105_v19 }
  0x24   :  { %144 = vmatpush.msra.mxu0 %v1568_v29  ;;  %164 = vmatpush.msra.mxu1 %v1570_v30 }
  0x25   :  { %267 = vmatpush.msra.mxu3 %v1551_v23  ;;  %182 = vmatpush.msra.mxu2 %v1597_v38 }
  0x26   :  { %145 = vmatpush.msra.mxu0 %v1579_v32  ;;  %165 = vmatpush.msra.mxu1 %v1581_v33 }
  0x27   :  { %268 = vmatpush.msra.mxu3 %v1568_v29  ;;  %183 = vmatpush.msra.mxu2 %v1607_v41 }
  0x28   :  { %146 = vmatpush.msra.mxu0 %v1590_v36  ;;  %166 = vmatpush.msra.mxu1 %v1592_v37 }
  0x29   :  { %269 = vmatpush.msra.mxu3 %v1579_v32  ;;  %184 = vmatpush.msra.mxu2 %v1617_v44 }
  0x2a   :  { %147 = vmatpush.msra.mxu0 %v1599_v39  ;;  %167 = vmatpush.msra.mxu1 %v1601_v40 }
  0x2b   :  { %270 = vmatpush.msra.mxu3 %v1590_v36  ;;  %185 = vmatpush.msra.mxu2 %v1628_v47 }
  0x2c   :  { %148 = vmatpush.msra.mxu0 %v1609_v42  ;;  %168 = vmatpush.msra.mxu1 %v1611_v43 }
  0x2d   :  { %271 = vmatpush.msra.mxu3 %v1599_v39  ;;  %186 = vmatpush.msra.mxu2 %v1633_v49 }
  0x2e   :  { %149 = vmatpush.msra.mxu0 %v1619_v45  ;;  %169 = vmatpush.msra.mxu1 %v1621_v46 }
  0x2f   :  { %150 = vmatmul.f32.vlgmr.msra.gmra.mxu0 %v1435_v48  ;;  %170 = vmatmul.f32.vlgmr.msra.gmra.mxu1 %v1435_v48 }
  0x30   :  { %278 = vmatpush.msrb.mxu0 %v1483_v1  ;;  %298 = vmatpush.msrb.mxu1 %v1516_v12 }
  0x31   :  { %272 = vmatpush.msra.mxu3 %v1609_v42  ;;  %187 = vmatpush.msra.mxu2 %v1637_v50 }
  0x32   :  { %279 = vmatpush.msrb.mxu0 %v1489_v3  ;;  %299 = vmatpush.msrb.mxu1 %v1521_v13 }
  0x33   :  { %273 = vmatpush.msra.mxu3 %v1619_v45  ;;  %188 = vmatpush.msra.mxu2 %v1643_v51 }
  0x34   :  { %280 = vmatpush.msrb.mxu0 %v1493_v5  ;;  %300 = vmatpush.msrb.mxu1 %v1531_v16 }
  0x35   :  { %399 = vmatpush.msrb.mxu3 %v1483_v1  ;;  %189 = vmatpush.msra.mxu2 %v1649_v52 }
  0x36   :  { %281 = vmatpush.msrb.mxu0 %v1500_v7  ;;  %301 = vmatpush.msrb.mxu1 %v1541_v20 }
  0x37   :  { %190 = vmatmul.f32.vlgmr.msra.gmra.mxu2 %v1435_v48  ;;  %400 = vmatpush.msrb.mxu3 %v1489_v3 }
  0x38   :  { %282 = vmatpush.msrb.mxu0 %v1507_v9  ;;  %302 = vmatpush.msrb.mxu1 %v1553_v24 }
  0x39   :  { %379 = vmatpush.msrb.mxu2 %v1481_v0  ;;  %401 = vmatpush.msrb.mxu3 %v1493_v5 }
  0x3a   :  { %283 = vmatpush.msrb.mxu0 %v1514_v11  ;;  %303 = vmatpush.msrb.mxu1 %v1564_v27 }
  0x3b   :  { %380 = vmatpush.msrb.mxu2 %v1485_v2  ;;  %402 = vmatpush.msrb.mxu3 %v1500_v7 }
  0x3c   :  { %284 = vmatpush.msrb.mxu0 %v1525_v15  ;;  %304 = vmatpush.msrb.mxu1 %v1576_v31 }
  0x3d   :  { %381 = vmatpush.msrb.mxu2 %v1491_v4  ;;  %403 = vmatpush.msrb.mxu3 %v1507_v9 }
  0x3e   :  { %285 = vmatpush.msrb.mxu0 %v1535_v18  ;;  %305 = vmatpush.msrb.mxu1 %v1588_v35 }
  0x3f   :  { %382 = vmatpush.msrb.mxu2 %v1498_v6  ;;  %404 = vmatpush.msrb.mxu3 %v1514_v11 }
  0x40   :  { %286 = vmatpush.msrb.mxu0 %v1545_v22  ;;  %306 = vmatpush.msrb.mxu1 %v1597_v38 }
  0x41   :  { %383 = vmatpush.msrb.mxu2 %v1505_v8  ;;  %405 = vmatpush.msrb.mxu3 %v1525_v15 }
  0x42   :  { %287 = vmatpush.msrb.mxu0 %v1555_v25  ;;  %307 = vmatpush.msrb.mxu1 %v1607_v41 }
  0x43   :  { %384 = vmatpush.msrb.mxu2 %v1512_v10  ;;  %406 = vmatpush.msrb.mxu3 %v1535_v18 }
  0x44   :  { %288 = vmatpush.msrb.mxu0 %v1570_v30  ;;  %308 = vmatpush.msrb.mxu1 %v1617_v44 }
  0x45   :  { %385 = vmatpush.msrb.mxu2 %v1523_v14  ;;  %407 = vmatpush.msrb.mxu3 %v1545_v22 }
  0x46   :  { %289 = vmatpush.msrb.mxu0 %v1581_v33  ;;  %309 = vmatpush.msrb.mxu1 %v1628_v47 }
  0x47   :  { %386 = vmatpush.msrb.mxu2 %v1533_v17  ;;  %408 = vmatpush.msrb.mxu3 %v1555_v25 }
  0x48   :  { %290 = vmatpush.msrb.mxu0 %v1592_v37  ;;  %310 = vmatpush.msrb.mxu1 %v1633_v49 }
  0x49   :  { %387 = vmatpush.msrb.mxu2 %v1543_v21  ;;  %409 = vmatpush.msrb.mxu3 %v1570_v30 }
  0x4a   :  { %291 = vmatpush.msrb.mxu0 %v1601_v40  ;;  %311 = vmatpush.msrb.mxu1 %v1637_v50 }
  0x4b   :  { %388 = vmatpush.msrb.mxu2 %v1551_v23  ;;  %410 = vmatpush.msrb.mxu3 %v1581_v33 }
  0x4c   :  { %292 = vmatpush.msrb.mxu0 %v1611_v43  ;;  %312 = vmatpush.msrb.mxu1 %v1643_v51 }
  0x4d   :  { %389 = vmatpush.msrb.mxu2 %v1568_v29  ;;  %411 = vmatpush.msrb.mxu3 %v1592_v37 }
  0x4e   :  { %293 = vmatpush.msrb.mxu0 %v1621_v46  ;;  %313 = vmatpush.msrb.mxu1 %v1649_v52 }
  0x4f   :  { %390 = vmatpush.msrb.mxu2 %v1579_v32  ;;  %412 = vmatpush.msrb.mxu3 %v1601_v40 }
  0x50   :  { %419 = vmatpush.msra.mxu0 %v1516_v12  ;;  %500 = vmatpush.msra.mxu1 %v1481_v0 }
  0x51   :  { %391 = vmatpush.msrb.mxu2 %v1590_v36  ;;  %413 = vmatpush.msrb.mxu3 %v1611_v43 }
  0x52   :  { %420 = vmatpush.msra.mxu0 %v1521_v13  ;;  %501 = vmatpush.msra.mxu1 %v1485_v2 }
  0x53   :  { %392 = vmatpush.msrb.mxu2 %v1599_v39  ;;  %414 = vmatpush.msrb.mxu3 %v1621_v46 }
  0x54   :  { %421 = vmatpush.msra.mxu0 %v1531_v16  ;;  %502 = vmatpush.msra.mxu1 %v1491_v4 }
  0x55   :  { %393 = vmatpush.msrb.mxu2 %v1609_v42  ;;  %1193 = vset.pattern.permute.xlu2 %v2105_v19 }
  0x56   :  { %422 = vmatpush.msra.mxu0 %v1541_v20  ;;  %503 = vmatpush.msra.mxu1 %v1498_v6 }
  0x57   :  { %394 = vmatpush.msrb.mxu2 %v1619_v45  ;;  %370 = vperm.xlu0 %1191, %v368_v34  }
  0x58   :  { %423 = vmatpush.msra.mxu0 %v1553_v24  ;;  %504 = vmatpush.msra.mxu1 %v1505_v8 }
  0x59   :  { %520 = vmatpush.msra.mxu2 %v1483_v1 }
  0x5a   :  { %424 = vmatpush.msra.mxu0 %v1564_v27  ;;  %505 = vmatpush.msra.mxu1 %v1512_v10 }
  0x5b   :  { %521 = vmatpush.msra.mxu2 %v1489_v3 }
  0x5c   :  { %425 = vmatpush.msra.mxu0 %v1576_v31  ;;  %506 = vmatpush.msra.mxu1 %v1523_v14 }
  0x5d   :  { %522 = vmatpush.msra.mxu2 %v1493_v5 }
  0x5e   :  { %426 = vmatpush.msra.mxu0 %v1588_v35  ;;  %507 = vmatpush.msra.mxu1 %v1533_v17 }
  0x5f   :  { %523 = vmatpush.msra.mxu2 %v1500_v7 }
  0x60   :  { %427 = vmatpush.msra.mxu0 %v1597_v38  ;;  %508 = vmatpush.msra.mxu1 %v1543_v21 }
  0x61   :  { %524 = vmatpush.msra.mxu2 %v1507_v9 }
  0x62   :  { %428 = vmatpush.msra.mxu0 %v1607_v41  ;;  %509 = vmatpush.msra.mxu1 %v1551_v23 }
  0x63   :  { %525 = vmatpush.msra.mxu2 %v1514_v11 }
  0x64   :  { %429 = vmatpush.msra.mxu0 %v1617_v44  ;;  %510 = vmatpush.msra.mxu1 %v1568_v29 }
  0x65   :  { %526 = vmatpush.msra.mxu2 %v1525_v15 }
  0x66   :  { %430 = vmatpush.msra.mxu0 %v1628_v47  ;;  %511 = vmatpush.msra.mxu1 %v1579_v32 }
  0x67   :  { %527 = vmatpush.msra.mxu2 %v1535_v18 }
  0x68   :  { %431 = vmatpush.msra.mxu0 %v1633_v49  ;;  %512 = vmatpush.msra.mxu1 %v1590_v36 }
  0x69   :  { %528 = vmatpush.msra.mxu2 %v1545_v22 }
  0x6a   :  { %432 = vmatpush.msra.mxu0 %v1637_v50  ;;  %513 = vmatpush.msra.mxu1 %v1599_v39 }
  0x6b   :  { %529 = vmatpush.msra.mxu2 %v1555_v25 }
  0x6c   :  { %433 = vmatpush.msra.mxu0 %v1643_v51  ;;  %514 = vmatpush.msra.mxu1 %v1609_v42 }
  0x6d   :  { %530 = vmatpush.msra.mxu2 %v1570_v30 }
  0x6e   :  { %434 = vmatpush.msra.mxu0 %v1649_v52  ;;  %515 = vmatpush.msra.mxu1 %v1619_v45  ;;  %v133_v52 = vld [vmem:[#allocation4 + $0x10] sm:$0xff] }
  0x6f   :  { %531 = vmatpush.msra.mxu2 %v1581_v33 }
  0x71   :  { %532 = vmatpush.msra.mxu2 %v1592_v37 }
  0x73   :  { %533 = vmatpush.msra.mxu2 %v1601_v40 }
  0x75   :  { %534 = vmatpush.msra.mxu2 %v1611_v43 }
  0x77   :  { %535 = vmatpush.msra.mxu2 %v1621_v46 }
  0xac   :  { %v151_v55 = vpop.f32.mrf.mxu0  ;;  %v171_v56 = vpop.f32.mrf.mxu1 }
  0xad   :  { %v194_v57 = vadd.f32 %v151_v55, %v131_v53  ;;  %v214_v58 = vadd.f32 %v171_v56, %v132_v54  ;;  %v1768_v55 = vld [vmem:[%s2097_s3] ss:$0 sm:$0xff] }
  0xaf   :  { %v1165_v59 = vmul.f32 -1.442695, %v194_v57  ;;  %v1166_v60 = vmul.f32 -1.442695, %v214_v58 }
  0xb1   :  { %1196 = vpow2.f32 %v1165_v59 }
  0xb2   :  { %1198 = vpow2.f32 %v1166_v60 }
  0xb7   :  { %v1197_v61 = vpop.eup %1196 }
  0xb8   :  { %v1199_v62 = vpop.eup %1198  ;;  %v198_v63 = vadd.f32 1.0, %v1197_v61 }
  0xb9   :  { %v218_v26 = vadd.f32 1.0, %v1199_v62 }
  0xba   :  { %1200 = vrcp.f32 %v198_v63  ;;  %v191_v57 = vpop.f32.mrf.mxu2  ;;  %v210_v58 = vand.u32 2147483648, %v198_v63  ;;  %v208_v60 = vand.u32 2147483647, %v198_v63  ;;  %vm204_vm3 = vweird.f32 %v198_v63 }
  0xbb   :  { %1202 = vrcp.f32 %v218_v26  ;;  %v237_v34 = vadd.f32 %v1768_v55, %v191_v57  ;;  %vm224_vm6 = vweird.f32 %v218_v26  ;;  %v228_v51 = vand.u32 2147483647, %v218_v26 }
  0xbc   :  { %v211_v19 = vor.u32 1.1754944e-38, %v210_v58  ;;  %vm209_vm5 = vcmp.eq.f32.partialorder %v208_v60, 8.507059e+37 }
  0xbd   :  { %vm229_vm9 = vcmp.eq.f32.partialorder %v228_v51, 8.507059e+37  ;;  %v2136_v51 = vld [vmem:[#allocation20_spill] sm:$0xff] }
  0xc0   :  { %v1201_v48 = vpop.eup %1200 }
  0xc1   :  { %v1203_v46 = vpop.eup %1202  ;;  %v200_v45 = vmul.f32 %v1201_v48, %v198_v63  ;;  %vm205_vm2 = vweird.f32 %v1201_v48 }
  0xc2   :  { %v220_v53 = vmul.f32 %v1203_v46, %v218_v26  ;;  %vm206_vm4 = vmor %vm204_vm3, %vm205_vm2  ;;  %vm225_vm7 = vweird.f32 %v1203_v46 }
  0xc3   :  { %v201_v54 = vsub.f32 1.0, %v200_v45  ;;  %vm226_vm8 = vmor %vm224_vm6, %vm225_vm7 }
  0xc4   :  { %v221_v56 = vsub.f32 1.0, %v220_v53  ;;  %v230_v53 = vand.u32 2147483648, %v218_v26 }
  0xc5   :  { %v202_v59 = vmul.f32 %v1201_v48, %v201_v54 }
  0xc6   :  { %v222_v61 = vmul.f32 %v1203_v46, %v221_v56  ;;  %v231_v56 = vor.u32 1.1754944e-38, %v230_v53 }
  0xc7   :  { %v203_v62 = vadd.f32 %v1201_v48, %v202_v59 }
  0xc8   :  { %v223_v45 = vadd.f32 %v1203_v46, %v222_v61 }
  0xc9   :  { %v207_v28 = vsel %vm206_vm4, %v1201_v48, %v203_v62 }
  0xca   :  { %v212_v43 = vsel %vm209_vm5, %v211_v19, %v207_v28  ;;  %v227_v40 = vsel %vm226_vm8, %v1203_v46, %v223_v45  ;;  %v2130_v19 = vld [vmem:[#allocation16_spill] sm:$0xff]  ;;  %v2131_v28 = vld [vmem:[#allocation21_spill] sm:$0xff]  ;;  %v2135_v46 = vld [vmem:[#allocation19_spill] sm:$0xff] }
  0xcb   :  { %v238_v42 = vmul.f32 %v237_v34, %v212_v43  ;;  %v232_v63 = vsel %vm229_vm9, %v231_v56, %v227_v40  ;;  %v2132_v40 = vld [vmem:[#allocation17_spill] sm:$0xff]  ;;  %v2134_v43 = vld [vmem:[#allocation22_spill] sm:$0xff]  ;;  %v255_v34 = vld [vmem:[#allocation4 + $0x18] sm:$0xff] }
  0xcc   :  { %v241_v57 = vsub.f32 1.0, %v232_v63  ;;  %v243_v48 = vmul.f32 0.0, %v232_v63 }
  0xcd   :  { %v239_v54 = vadd.f32 %v238_v42, %v133_v52  ;;  %v2133_v42 = vld [vmem:[#allocation18_spill] sm:$0xff]  ;;  %v256_v52 = vld [vmem:[#allocation4 + $0x20] sm:$0xff] }
  0xcf   :  { %1204 = vtanh.f32 %v239_v54 }
  0xd5   :  { %v1205_v59 = vpop.eup %1204 }
  0xd6   :  { %v242_v58 = vmul.f32 %v1205_v59, %v241_v57 }
  0xd8   :  { %v1771_v60 = vadd.f32 %v243_v48, %v242_v58  ;;  %v2137_v48 = vld [vmem:[#allocation14_spill] sm:$0xff] }
  0xd9   :  { %vm488_vm10 = vcmp.eq.s32.totalorder %v2137_v48, 2 }
  0xda   :  { %274 = vmatmul.f32.vlgmr.msra.gmra.mxu3 %v1771_v60  ;;  %294 = vmatmul.f32.vlgmr.msrb.gmra.mxu0 %v1771_v60 }
  0xdb   :  { %314 = vmatmul.f32.vlgmr.msrb.gmra.mxu1 %v1771_v60  ;;  %540 = vmatpush.msra.mxu3 %v1516_v12 }
  0xdc   :  { %621 = vmatpush.msrb.mxu0 %v1481_v0  ;;  %641 = vmatpush.msrb.mxu1 %v1483_v1 }
  0xdd   :  { %541 = vmatpush.msra.mxu3 %v1521_v13 }
  0xde   :  { %622 = vmatpush.msrb.mxu0 %v1485_v2  ;;  %642 = vmatpush.msrb.mxu1 %v1489_v3 }
  0xdf   :  { %542 = vmatpush.msra.mxu3 %v1531_v16 }
  0xe0   :  { %623 = vmatpush.msrb.mxu0 %v1491_v4  ;;  %643 = vmatpush.msrb.mxu1 %v1493_v5 }
  0xe1   :  { %543 = vmatpush.msra.mxu3 %v1541_v20 }
  0xe2   :  { %624 = vmatpush.msrb.mxu0 %v1498_v6  ;;  %644 = vmatpush.msrb.mxu1 %v1500_v7 }
  0xe3   :  { %544 = vmatpush.msra.mxu3 %v1553_v24 }
  0xe4   :  { %625 = vmatpush.msrb.mxu0 %v1505_v8  ;;  %645 = vmatpush.msrb.mxu1 %v1507_v9 }
  0xe5   :  { %545 = vmatpush.msra.mxu3 %v1564_v27 }
  0xe6   :  { %626 = vmatpush.msrb.mxu0 %v1512_v10  ;;  %646 = vmatpush.msrb.mxu1 %v1514_v11 }
  0xe7   :  { %546 = vmatpush.msra.mxu3 %v1576_v31 }
  0xe8   :  { %627 = vmatpush.msrb.mxu0 %v1523_v14  ;;  %647 = vmatpush.msrb.mxu1 %v1525_v15 }
  0xe9   :  { %547 = vmatpush.msra.mxu3 %v1588_v35 }
  0xea   :  { %628 = vmatpush.msrb.mxu0 %v1533_v17  ;;  %648 = vmatpush.msrb.mxu1 %v1535_v18 }
  0xeb   :  { %548 = vmatpush.msra.mxu3 %v1597_v38 }
  0xec   :  { %629 = vmatpush.msrb.mxu0 %v1543_v21  ;;  %649 = vmatpush.msrb.mxu1 %v1545_v22 }
  0xed   :  { %549 = vmatpush.msra.mxu3 %v1607_v41 }
  0xee   :  { %630 = vmatpush.msrb.mxu0 %v1551_v23  ;;  %650 = vmatpush.msrb.mxu1 %v1555_v25 }
  0xef   :  { %550 = vmatpush.msra.mxu3 %v1617_v44 }
  0xf0   :  { %631 = vmatpush.msrb.mxu0 %v1568_v29  ;;  %651 = vmatpush.msrb.mxu1 %v1570_v30 }
  0xf1   :  { %551 = vmatpush.msra.mxu3 %v1628_v47 }
  0xf2   :  { %632 = vmatpush.msrb.mxu0 %v1579_v32  ;;  %652 = vmatpush.msrb.mxu1 %v1581_v33 }
  0xf3   :  { %552 = vmatpush.msra.mxu3 %v1633_v49 }
  0xf4   :  { %633 = vmatpush.msrb.mxu0 %v1590_v36  ;;  %653 = vmatpush.msrb.mxu1 %v1592_v37 }
  0xf5   :  { %553 = vmatpush.msra.mxu3 %v1637_v50 }
  0xf6   :  { %634 = vmatpush.msrb.mxu0 %v1599_v39  ;;  %654 = vmatpush.msrb.mxu1 %v2130_v19 }
  0xf7   :  { %554 = vmatpush.msra.mxu3 %v2131_v28 }
  0xf8   :  { %635 = vmatpush.msrb.mxu0 %v2132_v40  ;;  %655 = vmatpush.msrb.mxu1 %v2133_v42 }
  0xf9   :  { %555 = vmatpush.msra.mxu3 %v2134_v43 }
  0xfa   :  { %636 = vmatpush.msrb.mxu0 %v2135_v46  ;;  %656 = vmatpush.msrb.mxu1 %v2136_v51  ;;  %v2138_v51 = vmov 0  }
  0xfb   :  { %v489_v46 = vsel %vm488_vm10, 1, %v2138_v51  ;;  %v257_v51 = vld [vmem:[#allocation4 + $0x28] sm:$0xff] }
  0xfc   :  { %491 = vperm.xlu1 %1192, %v489_v46  }
 0x157   :  { %v295_v26 = vpop.f32.mrf.mxu0 }
 0x158   :  { %v338_v61 = vadd.f32 %v295_v26, %v256_v52 }
 0x15a   :  { %v1168_v62 = vmul.f32 -1.442695, %v338_v61 }
 0x15c   :  { %1206 = vpow2.f32 %v1168_v62 }
 0x15d   :  { %v275_v45 = vpop.f32.mrf.mxu3 }
 0x15e   :  { %v318_v53 = vadd.f32 %v275_v45, %v255_v34 }
 0x160   :  { %v1167_v54 = vmul.f32 -1.442695, %v318_v53 }
 0x162   :  { %v1207_v56 = vpop.eup %1206  ;;  %1208 = vpow2.f32 %v1167_v54 }
 0x163   :  { %v342_v63 = vadd.f32 1.0, %v1207_v56  ;;  %v315_v56 = vpop.f32.mrf.mxu1 }
 0x164   :  { %v358_v48 = vadd.f32 %v1768_v55, %v315_v56 }
 0x165   :  { %1210 = vrcp.f32 %v342_v63  ;;  %vm348_vm0 = vweird.f32 %v342_v63 }
 0x168   :  { %v1209_v57 = vpop.eup %1208 }
 0x169   :  { %v322_v59 = vadd.f32 1.0, %v1209_v57 }
 0x16b   :  { %1212 = vrcp.f32 %v322_v59  ;;  %v1211_v58 = vpop.eup %1210  ;;  %v334_v34 = vand.u32 2147483648, %v322_v59  ;;  %v332_v53 = vand.u32 2147483647, %v322_v59  ;;  %vm328_vm12 = vweird.f32 %v322_v59 }
 0x16c   :  { %v344_v52 = vmul.f32 %v1211_v58, %v342_v63  ;;  %vm349_vm15 = vweird.f32 %v1211_v58 }
 0x16d   :  { %v335_v57 = vor.u32 1.1754944e-38, %v334_v34  ;;  %vm333_vm14 = vcmp.eq.f32.partialorder %v332_v53, 8.507059e+37  ;;  %vm350_vm1 = vmor %vm348_vm0, %vm349_vm15  ;;  %v2147_v53 = vld [vmem:[#allocation14_spill] sm:$0xff] }
 0x16e   :  { %v345_v62 = vsub.f32 1.0, %v344_v52  ;;  %v354_v52 = vand.u32 2147483648, %v342_v63  ;;  %vm609_vm3 = vcmp.eq.s32.totalorder %v2147_v53, 3 }
 0x170   :  { %v346_v54 = vmul.f32 %v1211_v58, %v345_v62  ;;  %v355_v39 = vor.u32 1.1754944e-38, %v354_v52 }
 0x171   :  { %v1213_v26 = vpop.eup %1212 }
 0x172   :  { %v324_v61 = vmul.f32 %v1213_v26, %v322_v59  ;;  %vm329_vm11 = vweird.f32 %v1213_v26  ;;  %v347_v46 = vadd.f32 %v1211_v58, %v346_v54  ;;  %v2148_v54 = vmov 0  }
 0x173   :  { %vm330_vm13 = vmor %vm328_vm12, %vm329_vm11  ;;  %vm730_vm12 = vcmp.eq.s32.totalorder %v2147_v53, 4 }
 0x174   :  { %v325_v43 = vsub.f32 1.0, %v324_v61  ;;  %v351_v62 = vsel %vm350_vm1, %v1211_v58, %v347_v46 }
 0x176   :  { %v326_v45 = vmul.f32 %v1213_v26, %v325_v43  ;;  %v352_v43 = vand.u32 2147483647, %v342_v63 }
 0x178   :  { %v327_v42 = vadd.f32 %v1213_v26, %v326_v45  ;;  %vm353_vm2 = vcmp.eq.f32.partialorder %v352_v43, 8.507059e+37 }
 0x179   :  { %v356_v59 = vsel %vm353_vm2, %v355_v39, %v351_v62 }
 0x17a   :  { %v331_v40 = vsel %vm330_vm13, %v1213_v26, %v327_v42  ;;  %v362_v34 = vsub.f32 1.0, %v356_v59  ;;  %v364_v42 = vmul.f32 %v356_v59, %v1771_v60 }
 0x17b   :  { %v336_v28 = vsel %vm333_vm14, %v335_v57, %v331_v40  ;;  %v610_v57 = vsel %vm609_vm3, 1, %v2148_v54 }
 0x17c   :  { %v359_v61 = vmul.f32 %v358_v48, %v336_v28  ;;  %612 = vperm.xlu1 %1192, %v610_v57  }
 0x17e   :  { %v360_v19 = vadd.f32 %v359_v61, %v257_v51 }
 0x180   :  { %1214 = vtanh.f32 %v360_v19 }
 0x186   :  { %v1215_v45 = vpop.eup %1214 }
 0x187   :  { %v363_v56 = vmul.f32 %v1215_v45, %v362_v34 }
 0x189   :  { %v1828_v26 = vadd.f32 %v364_v42, %v363_v56 }
 0x18b   :  { %395 = vmatmul.f32.vlgmr.msrb.gmra.mxu2 %v1828_v26  ;;  %415 = vmatmul.f32.vlgmr.msrb.gmra.mxu3 %v1828_v26 }
 0x18c   :  { %435 = vmatmul.f32.vlgmr.msra.gmra.mxu0 %v1828_v26  ;;  %661 = vmatpush.msrb.mxu2 %v1516_v12 }
 0x18d   :  { %742 = vmatpush.msrb.mxu3 %v1481_v0  ;;  %762 = vmatpush.msra.mxu0 %v1483_v1  ;;  %v2139_v0 = vld [vmem:[#allocation15_spill] sm:$0xff]  ;;  %v2140_v1 = vld [vmem:[#allocation16_spill] sm:$0xff] }
 0x18e   :  { %662 = vmatpush.msrb.mxu2 %v1521_v13 }
 0x18f   :  { %743 = vmatpush.msrb.mxu3 %v1485_v2  ;;  %763 = vmatpush.msra.mxu0 %v1489_v3  ;;  %v2141_v2 = vld [vmem:[#allocation21_spill] sm:$0xff] }
 0x190   :  { %663 = vmatpush.msrb.mxu2 %v1531_v16  ;;  %v2142_v3 = vld [vmem:[#allocation17_spill] sm:$0xff] }
 0x191   :  { %744 = vmatpush.msrb.mxu3 %v1491_v4  ;;  %764 = vmatpush.msra.mxu0 %v1493_v5  ;;  %v2143_v4 = vld [vmem:[#allocation18_spill] sm:$0xff] }
 0x192   :  { %664 = vmatpush.msrb.mxu2 %v1541_v20  ;;  %v2144_v5 = vld [vmem:[#allocation22_spill] sm:$0xff] }
 0x193   :  { %745 = vmatpush.msrb.mxu3 %v1498_v6  ;;  %765 = vmatpush.msra.mxu0 %v1500_v7  ;;  %v2145_v6 = vld [vmem:[#allocation19_spill] sm:$0xff]  ;;  %v2146_v7 = vld [vmem:[#allocation20_spill] sm:$0xff] }
 0x194   :  { %665 = vmatpush.msrb.mxu2 %v1553_v24 }
 0x195   :  { %746 = vmatpush.msrb.mxu3 %v1505_v8  ;;  %766 = vmatpush.msra.mxu0 %v1507_v9  ;;  %v376_v8 = vld [vmem:[#allocation4 + $0x30] sm:$0xff]  ;;  %v377_v9 = vld [vmem:[#allocation4 + $0x38] sm:$0xff] }
 0x196   :  { %666 = vmatpush.msrb.mxu2 %v1564_v27 }
 0x197   :  { %747 = vmatpush.msrb.mxu3 %v1512_v10  ;;  %767 = vmatpush.msra.mxu0 %v1514_v11 }
 0x198   :  { %667 = vmatpush.msrb.mxu2 %v1576_v31 }
 0x199   :  { %748 = vmatpush.msrb.mxu3 %v1523_v14  ;;  %768 = vmatpush.msra.mxu0 %v1525_v15 }
 0x19a   :  { %668 = vmatpush.msrb.mxu2 %v1588_v35 }
 0x19b   :  { %749 = vmatpush.msrb.mxu3 %v1533_v17  ;;  %769 = vmatpush.msra.mxu0 %v1535_v18 }
 0x19c   :  { %669 = vmatpush.msrb.mxu2 %v1597_v38 }
 0x19d   :  { %750 = vmatpush.msrb.mxu3 %v1543_v21  ;;  %770 = vmatpush.msra.mxu0 %v1545_v22 }
 0x19e   :  { %670 = vmatpush.msrb.mxu2 %v1607_v41 }
 0x19f   :  { %751 = vmatpush.msrb.mxu3 %v1551_v23  ;;  %771 = vmatpush.msra.mxu0 %v1555_v25 }
 0x1a0   :  { %671 = vmatpush.msrb.mxu2 %v1617_v44 }
 0x1a1   :  { %752 = vmatpush.msrb.mxu3 %v1568_v29  ;;  %772 = vmatpush.msra.mxu0 %v1570_v30 }
 0x1a2   :  { %672 = vmatpush.msrb.mxu2 %v1628_v47 }
 0x1a3   :  { %753 = vmatpush.msrb.mxu3 %v1579_v32  ;;  %773 = vmatpush.msra.mxu0 %v1581_v33 }
 0x1a4   :  { %673 = vmatpush.msrb.mxu2 %v1633_v49 }
 0x1a5   :  { %754 = vmatpush.msrb.mxu3 %v1590_v36  ;;  %774 = vmatpush.msra.mxu0 %v1592_v37 }
 0x1a6   :  { %674 = vmatpush.msrb.mxu2 %v1637_v50 }
 0x1a7   :  { %755 = vmatpush.msrb.mxu3 %v2139_v0  ;;  %775 = vmatpush.msra.mxu0 %v2140_v1 }
 0x1a8   :  { %675 = vmatpush.msrb.mxu2 %v2141_v2 }
 0x1a9   :  { %756 = vmatpush.msrb.mxu3 %v2142_v3  ;;  %776 = vmatpush.msra.mxu0 %v2143_v4 }
 0x1aa   :  { %676 = vmatpush.msrb.mxu2 %v2144_v5 }
 0x1ab   :  { %757 = vmatpush.msrb.mxu3 %v2145_v6  ;;  %777 = vmatpush.msra.mxu0 %v2146_v7 }
 0x209   :  { %v436_v42 = vpop.f32.mrf.mxu0 }
 0x20e   :  { %v396_v10 = vpop.f32.mrf.mxu2  ;;  %v416_v11 = vpop.f32.mrf.mxu3 }
 0x20f   :  { %v439_v39 = vadd.f32 %v396_v10, %v376_v8  ;;  %v459_v19 = vadd.f32 %v416_v11, %v377_v9  ;;  %v479_v11 = vadd.f32 %v1768_v55, %v436_v42  ;;  %v1898_v42 = vld [vmem:[#allocation7 + $0x150] sm:$0xff] }
 0x211   :  { %v1169_v28 = vmul.f32 -1.442695, %v439_v39  ;;  %v1170_v40 = vmul.f32 -1.442695, %v459_v19  ;;  %v378_v19 = vld [vmem:[#allocation4 + $0x40] sm:$0xff] }
 0x213   :  { %1216 = vpow2.f32 %v1169_v28 }
 0x214   :  { %1218 = vpow2.f32 %v1170_v40 }
 0x219   :  { %v1217_v51 = vpop.eup %1216 }
 0x21a   :  { %v1219_v63 = vpop.eup %1218  ;;  %v443_v58 = vadd.f32 1.0, %v1217_v51 }
 0x21b   :  { %v463_v48 = vadd.f32 1.0, %v1219_v63 }
 0x21c   :  { %1220 = vrcp.f32 %v443_v58  ;;  %v455_v59 = vand.u32 2147483648, %v443_v58  ;;  %v453_v56 = vand.u32 2147483647, %v443_v58  ;;  %vm449_vm5 = vweird.f32 %v443_v58 }
 0x21d   :  { %1222 = vrcp.f32 %v463_v48  ;;  %v475_v63 = vand.u32 2147483648, %v463_v48  ;;  %vm469_vm9 = vweird.f32 %v463_v48  ;;  %v473_v57 = vand.u32 2147483647, %v463_v48 }
 0x21e   :  { %v456_v10 = vor.u32 1.1754944e-38, %v455_v59  ;;  %vm454_vm7 = vcmp.eq.f32.partialorder %v453_v56, 8.507059e+37 }
 0x21f   :  { %vm474_vm11 = vcmp.eq.f32.partialorder %v473_v57, 8.507059e+37 }
 0x222   :  { %v1221_v46 = vpop.eup %1220 }
 0x223   :  { %v1223_v52 = vpop.eup %1222  ;;  %v445_v61 = vmul.f32 %v1221_v46, %v443_v58  ;;  %vm450_vm4 = vweird.f32 %v1221_v46 }
 0x224   :  { %v465_v43 = vmul.f32 %v1223_v52, %v463_v48  ;;  %vm451_vm6 = vmor %vm449_vm5, %vm450_vm4  ;;  %vm470_vm8 = vweird.f32 %v1223_v52  ;;  %v1891_v48 = vld [vmem:[#allocation7 + $0x168] sm:$0xff]  ;;  %vm851_vm5 = vcmp.eq.s32.totalorder %v2147_v53, 5 }
 0x225   :  { %v446_v62 = vsub.f32 1.0, %v445_v61  ;;  %vm471_vm10 = vmor %vm469_vm9, %vm470_vm8 }
 0x226   :  { %v466_v34 = vsub.f32 1.0, %v465_v43 }
 0x227   :  { %v447_v45 = vmul.f32 %v1221_v46, %v446_v62  ;;  %v476_v62 = vor.u32 1.1754944e-38, %v475_v63 }
 0x228   :  { %v467_v8 = vmul.f32 %v1223_v52, %v466_v34 }
 0x229   :  { %v448_v9 = vadd.f32 %v1221_v46, %v447_v45 }
 0x22a   :  { %v468_v40 = vadd.f32 %v1223_v52, %v467_v8  ;;  %v1901_v8 = vld [vmem:[#allocation7 + $0x158] sm:$0xff] }
 0x22b   :  { %v452_v39 = vsel %vm451_vm6, %v1221_v46, %v448_v9  ;;  %v1908_v9 = vld [vmem:[#allocation7 + $0x140] sm:$0xff] }
 0x22c   :  { %v457_v28 = vsel %vm454_vm7, %v456_v10, %v452_v39  ;;  %v472_v43 = vsel %vm471_vm10, %v1223_v52, %v468_v40  ;;  %v1894_v52 = vld [vmem:[#allocation7 + $0x170] sm:$0xff]  ;;  %v1915_v10 = vld [vmem:[#allocation7 + $0x128] sm:$0xff]  ;;  %v1929_v39 = vld [vmem:[#allocation7 + $0xf8] sm:$0xff] }
 0x22d   :  { %v480_v51 = vmul.f32 %v479_v11, %v457_v28  ;;  %v477_v58 = vsel %vm474_vm11, %v476_v62, %v472_v43  ;;  %v1922_v11 = vld [vmem:[#allocation7 + $0x110] sm:$0xff] }
 0x22e   :  { %v483_v59 = vsub.f32 1.0, %v477_v58  ;;  %v485_v46 = vmul.f32 %v477_v58, %v1828_v26 }
 0x22f   :  { %v481_v61 = vadd.f32 %v480_v51, %v378_v19 }
 0x231   :  { %1224 = vtanh.f32 %v481_v61 }
 0x237   :  { %v1225_v34 = vpop.eup %1224 }
 0x238   :  { %v484_v45 = vmul.f32 %v1225_v34, %v483_v59  ;;  %v1971_v34 = vld [vmem:[#allocation7 + $0x178] sm:$0xff] }
 0x23a   :  { %v1885_v56 = vadd.f32 %v485_v46, %v484_v45  ;;  %v1976_v45 = vld [vmem:[#allocation7 + $0x160] sm:$0xff]  ;;  %v1981_v46 = vld [vmem:[#allocation7 + $0x148] sm:$0xff] }
 0x23c   :  { %516 = vmatmul.f32.vlgmr.msra.gmra.mxu1 %v1885_v56  ;;  %536 = vmatmul.f32.vlgmr.msra.gmra.mxu2 %v1885_v56 }
 0x23d   :  { %556 = vmatmul.f32.vlgmr.msra.gmra.mxu3 %v1885_v56  ;;  %782 = vmatpush.msra.mxu1 %v1516_v12  ;;  %v1905_v12 = vld [vmem:[#allocation7 + $0x138] sm:$0xff] }
 0x23e   :  { %863 = vmatpush.msra.mxu2 %v1891_v48  ;;  %883 = vmatpush.msra.mxu3 %v1894_v52 }
 0x23f   :  { %783 = vmatpush.msra.mxu1 %v1521_v13  ;;  %v1912_v13 = vld [vmem:[#allocation7 + $0x120] sm:$0xff] }
 0x240   :  { %864 = vmatpush.msra.mxu2 %v1898_v42  ;;  %884 = vmatpush.msra.mxu3 %v1901_v8 }
 0x241   :  { %784 = vmatpush.msra.mxu1 %v1531_v16  ;;  %v1919_v16 = vld [vmem:[#allocation7 + $0x108] sm:$0xff] }
 0x242   :  { %865 = vmatpush.msra.mxu2 %v1905_v12  ;;  %885 = vmatpush.msra.mxu3 %v1908_v9 }
 0x243   :  { %785 = vmatpush.msra.mxu1 %v1541_v20  ;;  %v1926_v20 = vld [vmem:[#allocation7 + $0xf0] sm:$0xff] }
 0x244   :  { %866 = vmatpush.msra.mxu2 %v1912_v13  ;;  %886 = vmatpush.msra.mxu3 %v1915_v10 }
 0x245   :  { %786 = vmatpush.msra.mxu1 %v1553_v24 }
 0x246   :  { %867 = vmatpush.msra.mxu2 %v1919_v16  ;;  %887 = vmatpush.msra.mxu3 %v1922_v11 }
 0x247   :  { %787 = vmatpush.msra.mxu1 %v1564_v27 }
 0x248   :  { %868 = vmatpush.msra.mxu2 %v1926_v20  ;;  %888 = vmatpush.msra.mxu3 %v1929_v39 }
 0x249   :  { %788 = vmatpush.msra.mxu1 %v1576_v31 }
 0x24a   :  { %869 = vmatpush.msra.mxu2 %v1523_v14  ;;  %889 = vmatpush.msra.mxu3 %v1525_v15  ;;  %v497_v14 = vld [vmem:[#allocation4 + $0x48] sm:$0xff] }
 0x24b   :  { %789 = vmatpush.msra.mxu1 %v1588_v35 }
 0x24c   :  { %870 = vmatpush.msra.mxu2 %v1533_v17  ;;  %890 = vmatpush.msra.mxu3 %v1535_v18 }
 0x24d   :  { %790 = vmatpush.msra.mxu1 %v1597_v38 }
 0x24e   :  { %871 = vmatpush.msra.mxu2 %v1543_v21  ;;  %891 = vmatpush.msra.mxu3 %v1545_v22  ;;  %v498_v21 = vld [vmem:[#allocation4 + $0x50] sm:$0xff] }
 0x24f   :  { %791 = vmatpush.msra.mxu1 %v1607_v41 }
 0x250   :  { %872 = vmatpush.msra.mxu2 %v1551_v23  ;;  %892 = vmatpush.msra.mxu3 %v1555_v25 }
 0x251   :  { %792 = vmatpush.msra.mxu1 %v1617_v44 }
 0x252   :  { %873 = vmatpush.msra.mxu2 %v1568_v29  ;;  %893 = vmatpush.msra.mxu3 %v1570_v30  ;;  %v731_v29 = vsel %vm730_vm12, 1, %v2148_v54 }
 0x253   :  { %793 = vmatpush.msra.mxu1 %v1628_v47  ;;  %733 = vperm.xlu2 %1193, %v731_v29   ;;  %v1313_v29 = vld [vmem:[#allocation7 + $0x48] sm:$0xff] }
 0x254   :  { %874 = vmatpush.msra.mxu2 %v1579_v32  ;;  %894 = vmatpush.msra.mxu3 %v1581_v33 }
 0x255   :  { %794 = vmatpush.msra.mxu1 %v1633_v49 }
 0x256   :  { %875 = vmatpush.msra.mxu2 %v1590_v36  ;;  %895 = vmatpush.msra.mxu3 %v1592_v37 }
 0x257   :  { %795 = vmatpush.msra.mxu1 %v1637_v50 }
 0x258   :  { %876 = vmatpush.msra.mxu2 %v2139_v0  ;;  %896 = vmatpush.msra.mxu3 %v2140_v1 }
 0x259   :  { %796 = vmatpush.msra.mxu1 %v2141_v2 }
 0x25a   :  { %877 = vmatpush.msra.mxu2 %v2142_v3  ;;  %897 = vmatpush.msra.mxu3 %v2143_v4  ;;  %v499_v3 = vld [vmem:[#allocation4 + $0x58] sm:$0xff] }
 0x25b   :  { %797 = vmatpush.msra.mxu1 %v2144_v5 }
 0x25c   :  { %878 = vmatpush.msra.mxu2 %v2145_v6  ;;  %898 = vmatpush.msra.mxu3 %v2146_v7 }
 0x2b9   :  { %v517_v15 = vpop.f32.mrf.mxu1 }
 0x2ba   :  { %v560_v17 = vadd.f32 %v517_v15, %v497_v14  ;;  %v1986_v14 = vld [vmem:[#allocation7 + $0x130] sm:$0xff] }
 0x2bb   :  { %v1304_v15 = vld [vmem:[#allocation7 + $0x90] sm:$0xff] }
 0x2bc   :  { %v1171_v18 = vmul.f32 -1.442695, %v560_v17  ;;  %v1305_v17 = vld [vmem:[#allocation7 + $0x98] sm:$0xff] }
 0x2be   :  { %1226 = vpow2.f32 %v1171_v18  ;;  %v2013_v18 = vld [vmem:[#allocation7 + $0x88] sm:$0xff] }
 0x2bf   :  { %v537_v22 = vpop.f32.mrf.mxu2 }
 0x2c0   :  { %v580_v23 = vadd.f32 %v537_v22, %v498_v21  ;;  %v557_v44 = vpop.f32.mrf.mxu3  ;;  %v1307_v21 = vld [vmem:[#allocation7 + $0x78] sm:$0xff]  ;;  %v1308_v22 = vld [vmem:[#allocation7 + $0x80] sm:$0xff] }
 0x2c1   :  { %v600_v2 = vadd.f32 %v1768_v55, %v557_v44  ;;  %v1323_v44 = vld [vmem:[#allocation7 + $0x8] sm:$0xff] }
 0x2c2   :  { %v1172_v24 = vmul.f32 -1.442695, %v580_v23  ;;  %v2016_v23 = vld [vmem:[#allocation7 + $0x70] sm:$0xff] }
 0x2c4   :  { %v1227_v25 = vpop.eup %1226  ;;  %1228 = vpow2.f32 %v1172_v24  ;;  %v1310_v24 = vld [vmem:[#allocation7 + $0x60] sm:$0xff] }
 0x2c5   :  { %v564_v27 = vadd.f32 1.0, %v1227_v25  ;;  %v1311_v25 = vld [vmem:[#allocation7 + $0x68] sm:$0xff] }
 0x2c7   :  { %1230 = vrcp.f32 %v564_v27  ;;  %v576_v36 = vand.u32 2147483648, %v564_v27  ;;  %v574_v38 = vand.u32 2147483647, %v564_v27  ;;  %vm570_vm14 = vweird.f32 %v564_v27 }
 0x2c9   :  { %v577_v50 = vor.u32 1.1754944e-38, %v576_v36  ;;  %vm575_vm0 = vcmp.eq.f32.partialorder %v574_v38, 8.507059e+37  ;;  %v1319_v36 = vld [vmem:[#allocation7 + $0x18] sm:$0xff]  ;;  %v2028_v38 = vld [vmem:[#allocation7 + $0x10] sm:$0xff] }
 0x2ca   :  { %v1229_v30 = vpop.eup %1228 }
 0x2cb   :  { %v584_v31 = vadd.f32 1.0, %v1229_v30  ;;  %v1314_v30 = vld [vmem:[#allocation7 + $0x50] sm:$0xff] }
 0x2cd   :  { %v1231_v32 = vpop.eup %1230  ;;  %1232 = vrcp.f32 %v584_v31  ;;  %v596_v6 = vand.u32 2147483648, %v584_v31  ;;  %v594_v19 = vand.u32 2147483647, %v584_v31  ;;  %vm590_vm2 = vweird.f32 %v584_v31 }
 0x2ce   :  { %v566_v33 = vmul.f32 %v1231_v32, %v564_v27  ;;  %vm571_vm13 = vweird.f32 %v1231_v32  ;;  %v2019_v27 = vld [vmem:[#allocation7 + $0x58] sm:$0xff] }
 0x2cf   :  { %vm572_vm15 = vmor %vm570_vm14, %vm571_vm13  ;;  %v597_v51 = vor.u32 1.1754944e-38, %v596_v6  ;;  %vm595_vm4 = vcmp.eq.f32.partialorder %v594_v19, 8.507059e+37  ;;  %vm972_vm14 = vcmp.eq.s32.totalorder %v2147_v53, 6 }
 0x2d0   :  { %v567_v35 = vsub.f32 1.0, %v566_v33  ;;  %v1317_v33 = vld [vmem:[#allocation7 + $0x38] sm:$0xff] }
 0x2d2   :  { %v568_v37 = vmul.f32 %v1231_v32, %v567_v35  ;;  %v2025_v35 = vld [vmem:[#allocation7 + $0x28] sm:$0xff] }
 0x2d3   :  { %v1233_v41 = vpop.eup %1232 }
 0x2d4   :  { %v586_v47 = vmul.f32 %v1233_v41, %v584_v31  ;;  %v569_v49 = vadd.f32 %v1231_v32, %v568_v37  ;;  %vm591_vm1 = vweird.f32 %v1233_v41  ;;  %v2022_v31 = vld [vmem:[#allocation7 + $0x40] sm:$0xff] }
 0x2d5   :  { %vm592_vm3 = vmor %vm590_vm2, %vm591_vm1  ;;  %v1320_v37 = vld [vmem:[#allocation7 + $0x20] sm:$0xff] }
 0x2d6   :  { %v587_v0 = vsub.f32 1.0, %v586_v47  ;;  %v573_v1 = vsel %vm572_vm15, %v1231_v32, %v569_v49  ;;  %v1316_v32 = vld [vmem:[#allocation7 + $0x30] sm:$0xff]  ;;  %v618_v47 = vld [vmem:[#allocation4 + $0x60] sm:$0xff]  ;;  %v619_v49 = vld [vmem:[#allocation4 + $0x68] sm:$0xff] }
 0x2d7   :  { %v578_v4 = vsel %vm575_vm0, %v577_v50, %v573_v1 }
 0x2d8   :  { %v588_v5 = vmul.f32 %v1233_v41, %v587_v0  ;;  %v601_v7 = vmul.f32 %v600_v2, %v578_v4 }
 0x2da   :  { %v589_v28 = vadd.f32 %v1233_v41, %v588_v5  ;;  %v602_v40 = vadd.f32 %v601_v7, %v499_v3 }
 0x2dc   :  { %v593_v63 = vsel %vm592_vm3, %v1233_v41, %v589_v28  ;;  %1234 = vtanh.f32 %v602_v40  ;;  %v1322_v41 = vld [vmem:[#allocation7] sm:$0xff]  ;;  %v852_v28 = vsel %vm851_vm5, 1, %v2148_v54 }
 0x2dd   :  { %v598_v57 = vsel %vm595_vm4, %v597_v51, %v593_v63  ;;  %854 = vperm.xlu2 %1193, %v852_v28  }
 0x2de   :  { %v604_v61 = vsub.f32 1.0, %v598_v57  ;;  %v606_v58 = vmul.f32 %v598_v57, %v1885_v56 }
 0x2e2   :  { %v1235_v43 = vpop.eup %1234 }
 0x2e3   :  { %v605_v62 = vmul.f32 %v1235_v43, %v604_v61 }
 0x2e5   :  { %v1966_v59 = vadd.f32 %v606_v58, %v605_v62 }
 0x2e7   :  { %637 = vmatmul.f32.vlgmr.msrb.gmra.mxu0 %v1966_v59  ;;  %657 = vmatmul.f32.vlgmr.msrb.gmra.mxu1 %v1966_v59 }
 0x2e8   :  { %677 = vmatmul.f32.vlgmr.msrb.gmra.mxu2 %v1966_v59  ;;  %903 = vmatpush.msrb.mxu0 %v1971_v34 }
 0x2e9   :  { %984 = vmatpush.msrb.mxu1 %v1891_v48  ;;  %1004 = vmatpush.msrb.mxu2 %v1894_v52  ;;  %v1991_v48 = vld [vmem:[#allocation7 + $0x118] sm:$0xff]  ;;  %v1996_v52 = vld [vmem:[#allocation7 + $0x100] sm:$0xff] }
 0x2ea   :  { %904 = vmatpush.msrb.mxu0 %v1976_v45 }
 0x2eb   :  { %985 = vmatpush.msrb.mxu1 %v1898_v42  ;;  %1005 = vmatpush.msrb.mxu2 %v1901_v8  ;;  %v2001_v42 = vld [vmem:[#allocation7 + $0xe8] sm:$0xff]  ;;  %v1295_v8 = vld [vmem:[#allocation7 + $0xd8] sm:$0xff] }
 0x2ec   :  { %905 = vmatpush.msrb.mxu0 %v1981_v46 }
 0x2ed   :  { %986 = vmatpush.msrb.mxu1 %v1905_v12  ;;  %1006 = vmatpush.msrb.mxu2 %v1908_v9  ;;  %v1296_v12 = vld [vmem:[#allocation7 + $0xe0] sm:$0xff]  ;;  %v2004_v9 = vld [vmem:[#allocation7 + $0xd0] sm:$0xff] }
 0x2ee   :  { %906 = vmatpush.msrb.mxu0 %v1986_v14 }
 0x2ef   :  { %987 = vmatpush.msrb.mxu1 %v1912_v13  ;;  %1007 = vmatpush.msrb.mxu2 %v1915_v10  ;;  %v1298_v13 = vld [vmem:[#allocation7 + $0xc0] sm:$0xff]  ;;  %v1299_v10 = vld [vmem:[#allocation7 + $0xc8] sm:$0xff] }
 0x2f0   :  { %907 = vmatpush.msrb.mxu0 %v1991_v48 }
 0x2f1   :  { %988 = vmatpush.msrb.mxu1 %v1919_v16  ;;  %1008 = vmatpush.msrb.mxu2 %v1922_v11  ;;  %v2007_v16 = vld [vmem:[#allocation7 + $0xb8] sm:$0xff]  ;;  %v1301_v11 = vld [vmem:[#allocation7 + $0xa8] sm:$0xff] }
 0x2f2   :  { %908 = vmatpush.msrb.mxu0 %v1996_v52 }
 0x2f3   :  { %989 = vmatpush.msrb.mxu1 %v1926_v20  ;;  %1009 = vmatpush.msrb.mxu2 %v1929_v39  ;;  %v1302_v20 = vld [vmem:[#allocation7 + $0xb0] sm:$0xff]  ;;  %v2010_v39 = vld [vmem:[#allocation7 + $0xa0] sm:$0xff] }
 0x2f4   :  { %909 = vmatpush.msrb.mxu0 %v2001_v42 }
 0x2f5   :  { %990 = vmatpush.msrb.mxu1 %v1295_v8  ;;  %1010 = vmatpush.msrb.mxu2 %v1296_v12 }
 0x2f6   :  { %910 = vmatpush.msrb.mxu0 %v2004_v9 }
 0x2f7   :  { %991 = vmatpush.msrb.mxu1 %v1298_v13  ;;  %1011 = vmatpush.msrb.mxu2 %v1299_v10 }
 0x2f8   :  { %911 = vmatpush.msrb.mxu0 %v2007_v16 }
 0x2f9   :  { %992 = vmatpush.msrb.mxu1 %v1301_v11  ;;  %1012 = vmatpush.msrb.mxu2 %v1302_v20 }
 0x2fa   :  { %912 = vmatpush.msrb.mxu0 %v2010_v39 }
 0x2fb   :  { %993 = vmatpush.msrb.mxu1 %v1304_v15  ;;  %1013 = vmatpush.msrb.mxu2 %v1305_v17 }
 0x2fc   :  { %913 = vmatpush.msrb.mxu0 %v2013_v18 }
 0x2fd   :  { %994 = vmatpush.msrb.mxu1 %v1307_v21  ;;  %1014 = vmatpush.msrb.mxu2 %v1308_v22  ;;  %v620_v21 = vld [vmem:[#allocation4 + $0x70] sm:$0xff] }
 0x2fe   :  { %914 = vmatpush.msrb.mxu0 %v2016_v23 }
 0x2ff   :  { %995 = vmatpush.msrb.mxu1 %v1310_v24  ;;  %1015 = vmatpush.msrb.mxu2 %v1311_v25 }
 0x300   :  { %915 = vmatpush.msrb.mxu0 %v2019_v27 }
 0x301   :  { %996 = vmatpush.msrb.mxu1 %v1313_v29  ;;  %1016 = vmatpush.msrb.mxu2 %v1314_v30 }
 0x302   :  { %916 = vmatpush.msrb.mxu0 %v2022_v31 }
 0x303   :  { %997 = vmatpush.msrb.mxu1 %v1316_v32  ;;  %1017 = vmatpush.msrb.mxu2 %v1317_v33 }
 0x304   :  { %917 = vmatpush.msrb.mxu0 %v2025_v35 }
 0x305   :  { %998 = vmatpush.msrb.mxu1 %v1319_v36  ;;  %1018 = vmatpush.msrb.mxu2 %v1320_v37 }
 0x306   :  { %918 = vmatpush.msrb.mxu0 %v2028_v38 }
 0x307   :  { %999 = vmatpush.msrb.mxu1 %v1322_v41  ;;  %1019 = vmatpush.msrb.mxu2 %v1323_v44 }
 0x364   :  { %v638_v50 = vpop.f32.mrf.mxu0  ;;  %v658_v0 = vpop.f32.mrf.mxu1 }
 0x365   :  { %v681_v1 = vadd.f32 %v638_v50, %v618_v47  ;;  %v701_v2 = vadd.f32 %v658_v0, %v619_v49 }
 0x367   :  { %v1173_v3 = vmul.f32 -1.442695, %v681_v1  ;;  %v1174_v4 = vmul.f32 -1.442695, %v701_v2 }
 0x369   :  { %1236 = vpow2.f32 %v1173_v3 }
 0x36a   :  { %1238 = vpow2.f32 %v1174_v4 }
 0x36b   :  { %v678_v13 = vpop.f32.mrf.mxu2 }
 0x36c   :  { %v721_v15 = vadd.f32 %v1768_v55, %v678_v13 }
 0x36f   :  { %v1237_v5 = vpop.eup %1236 }
 0x370   :  { %v1239_v6 = vpop.eup %1238  ;;  %v685_v7 = vadd.f32 1.0, %v1237_v5 }
 0x371   :  { %v705_v19 = vadd.f32 1.0, %v1239_v6 }
 0x372   :  { %1240 = vrcp.f32 %v685_v7  ;;  %v697_v62 = vand.u32 2147483648, %v685_v7  ;;  %v695_v8 = vand.u32 2147483647, %v685_v7  ;;  %vm691_vm7 = vweird.f32 %v685_v7 }
 0x373   :  { %1242 = vrcp.f32 %v705_v19  ;;  %v717_v24 = vand.u32 2147483648, %v705_v19  ;;  %vm711_vm11 = vweird.f32 %v705_v19  ;;  %v715_v29 = vand.u32 2147483647, %v705_v19 }
 0x374   :  { %v698_v11 = vor.u32 1.1754944e-38, %v697_v62  ;;  %vm696_vm9 = vcmp.eq.f32.partialorder %v695_v8, 8.507059e+37 }
 0x375   :  { %v718_v33 = vor.u32 1.1754944e-38, %v717_v24  ;;  %vm716_vm13 = vcmp.eq.f32.partialorder %v715_v29, 8.507059e+37 }
 0x378   :  { %v1241_v40 = vpop.eup %1240 }
 0x379   :  { %v1243_v51 = vpop.eup %1242  ;;  %v687_v63 = vmul.f32 %v1241_v40, %v685_v7  ;;  %vm692_vm6 = vweird.f32 %v1241_v40 }
 0x37a   :  { %v707_v57 = vmul.f32 %v1243_v51, %v705_v19  ;;  %vm693_vm8 = vmor %vm691_vm7, %vm692_vm6  ;;  %vm712_vm10 = vweird.f32 %v1243_v51  ;;  %v2061_v19 = vld [vmem:[%s2097_s3] ss:$0 sm:$0xff]  ;;  %vm1093_vm7 = vcmp.eq.s32.totalorder %v2147_v53, 7 }
 0x37b   :  { %v688_v61 = vsub.f32 1.0, %v687_v63  ;;  %vm713_vm12 = vmor %vm711_vm11, %vm712_vm10  ;;  %v741_v63 = vld [vmem:[#allocation4 + $0x88] sm:$0xff] }
 0x37c   :  { %v708_v43 = vsub.f32 1.0, %v707_v57 }
 0x37d   :  { %v689_v58 = vmul.f32 %v1241_v40, %v688_v61 }
 0x37e   :  { %v709_v12 = vmul.f32 %v1243_v51, %v708_v43 }
 0x37f   :  { %v690_v10 = vadd.f32 %v1241_v40, %v689_v58 }
 0x380   :  { %v710_v17 = vadd.f32 %v1243_v51, %v709_v12 }
 0x381   :  { %v694_v20 = vsel %vm693_vm8, %v1241_v40, %v690_v10 }
 0x382   :  { %v699_v22 = vsel %vm696_vm9, %v698_v11, %v694_v20  ;;  %v714_v32 = vsel %vm713_vm12, %v1243_v51, %v710_v17 }
 0x383   :  { %v722_v25 = vmul.f32 %v721_v15, %v699_v22  ;;  %v719_v36 = vsel %vm716_vm13, %v718_v33, %v714_v32  ;;  %v861_v22 = vld [vmem:[#allocation4 + $0x98] sm:$0xff] }
 0x384   :  { %v725_v37 = vsub.f32 1.0, %v719_v36  ;;  %v727_v55 = vmul.f32 %v719_v36, %v1966_v59 }
 0x385   :  { %v723_v30 = vadd.f32 %v722_v25, %v620_v21  ;;  %v860_v21 = vld [vmem:[#allocation4 + $0x90] sm:$0xff] }
 0x387   :  { %1244 = vtanh.f32 %v723_v30 }
 0x38d   :  { %v1245_v41 = vpop.eup %1244 }
 0x38e   :  { %v726_v44 = vmul.f32 %v1245_v41, %v725_v37 }
 0x390   :  { %v2035_v47 = vadd.f32 %v727_v55, %v726_v44  ;;  %v1094_v55 = vsel %vm1093_vm7, 1, %v2148_v54 }
 0x391   :  { %1096 = vperm.xlu1 %1192, %v1094_v55  }
 0x392   :  { %758 = vmatmul.f32.vlgmr.msrb.gmra.mxu3 %v2035_v47  ;;  %778 = vmatmul.f32.vlgmr.msra.gmra.mxu0 %v2035_v47 }
 0x393   :  { %798 = vmatmul.f32.vlgmr.msra.gmra.mxu1 %v2035_v47  ;;  %1024 = vmatpush.msrb.mxu3 %v1971_v34  ;;  %v740_v34 = vld [vmem:[#allocation4 + $0x80] sm:$0xff] }
 0x395   :  { %1025 = vmatpush.msrb.mxu3 %v1976_v45 }
 0x397   :  { %1026 = vmatpush.msrb.mxu3 %v1981_v46 }
 0x399   :  { %1027 = vmatpush.msrb.mxu3 %v1986_v14 }
 0x39b   :  { %1028 = vmatpush.msrb.mxu3 %v1991_v48  ;;  %v739_v48 = vld [vmem:[#allocation4 + $0x78] sm:$0xff] }
 0x39d   :  { %1029 = vmatpush.msrb.mxu3 %v1996_v52 }
 0x39f   :  { %1030 = vmatpush.msrb.mxu3 %v2001_v42 }
 0x3a1   :  { %1031 = vmatpush.msrb.mxu3 %v2004_v9 }
 0x3a3   :  { %1032 = vmatpush.msrb.mxu3 %v2007_v16 }
 0x3a5   :  { %1033 = vmatpush.msrb.mxu3 %v2010_v39 }
 0x3a7   :  { %1034 = vmatpush.msrb.mxu3 %v2013_v18 }
 0x3a9   :  { %1035 = vmatpush.msrb.mxu3 %v2016_v23 }
 0x3ab   :  { %1036 = vmatpush.msrb.mxu3 %v2019_v27 }
 0x3ad   :  { %1037 = vmatpush.msrb.mxu3 %v2022_v31  ;;  %v973_v31 = vsel %vm972_vm14, 1, %v2148_v54 }
 0x3ae   :  { %975 = vperm.xlu0 %1191, %v973_v31   ;;  %v862_v31 = vld [vmem:[#allocation4 + $0xa0] sm:$0xff] }
 0x3af   :  { %1038 = vmatpush.msrb.mxu3 %v2025_v35 }
 0x3b1   :  { %1039 = vmatpush.msrb.mxu3 %v2028_v38 }
 0x40f   :  { %v779_v45 = vpop.f32.mrf.mxu0 }
 0x410   :  { %v822_v46 = vadd.f32 %v779_v45, %v740_v34  ;;  %v799_v5 = vpop.f32.mrf.mxu1 }
 0x411   :  { %v842_v28 = vadd.f32 %v2061_v19, %v799_v5 }
 0x412   :  { %v1176_v14 = vmul.f32 -1.442695, %v822_v46 }
 0x414   :  { %1246 = vpow2.f32 %v1176_v14 }
 0x415   :  { %v759_v52 = vpop.f32.mrf.mxu3 }
 0x416   :  { %v802_v42 = vadd.f32 %v759_v52, %v739_v48 }
 0x418   :  { %v1175_v9 = vmul.f32 -1.442695, %v802_v42 }
 0x41a   :  { %v1247_v16 = vpop.eup %1246  ;;  %1248 = vpow2.f32 %v1175_v9 }
 0x41b   :  { %v826_v39 = vadd.f32 1.0, %v1247_v16 }
 0x41d   :  { %1250 = vrcp.f32 %v826_v39  ;;  %v838_v61 = vand.u32 2147483648, %v826_v39  ;;  %vm832_vm4 = vweird.f32 %v826_v39  ;;  %v836_v62 = vand.u32 2147483647, %v826_v39 }
 0x41f   :  { %v839_v12 = vor.u32 1.1754944e-38, %v838_v61  ;;  %vm837_vm6 = vcmp.eq.f32.partialorder %v836_v62, 8.507059e+37  ;;  %v1117_v61 = vld [vmem:[#allocation9 + $0x60] sm:$0xff]  ;;  %v1115_v62 = vld [vmem:[#allocation9 + $0x50] sm:$0xff] }
 0x420   :  { %v1249_v18 = vpop.eup %1248 }
 0x421   :  { %v806_v23 = vadd.f32 1.0, %v1249_v18 }
 0x423   :  { %1252 = vrcp.f32 %v806_v23  ;;  %v1251_v27 = vpop.eup %1250  ;;  %v818_v1 = vand.u32 2147483648, %v806_v23  ;;  %v816_v3 = vand.u32 2147483647, %v806_v23  ;;  %vm812_vm0 = vweird.f32 %v806_v23 }
 0x424   :  { %v828_v35 = vmul.f32 %v1251_v27, %v826_v39  ;;  %vm833_vm3 = vweird.f32 %v1251_v27 }
 0x425   :  { %v819_v7 = vor.u32 1.1754944e-38, %v818_v1  ;;  %vm817_vm2 = vcmp.eq.f32.partialorder %v816_v3, 8.507059e+37  ;;  %vm834_vm5 = vmor %vm832_vm4, %vm833_vm3 }
 0x426   :  { %v829_v50 = vsub.f32 1.0, %v828_v35 }
 0x428   :  { %v830_v4 = vmul.f32 %v1251_v27, %v829_v50 }
 0x429   :  { %v1253_v38 = vpop.eup %1252 }
 0x42a   :  { %v808_v49 = vmul.f32 %v1253_v38, %v806_v23  ;;  %vm813_vm15 = vweird.f32 %v1253_v38  ;;  %v831_v51 = vadd.f32 %v1251_v27, %v830_v4 }
 0x42b   :  { %vm814_vm1 = vmor %vm812_vm0, %vm813_vm15 }
 0x42c   :  { %v809_v0 = vsub.f32 1.0, %v808_v49  ;;  %v835_v8 = vsel %vm834_vm5, %v1251_v27, %v831_v51  ;;  %v1120_v51 = vld [vmem:[#allocation9 + $0x78] sm:$0xff] }
 0x42d   :  { %v840_v13 = vsel %vm837_vm6, %v839_v12, %v835_v8  ;;  %1125 = vmatpush.msra.mxu0 %v1120_v51  ;;  %v981_v8 = vld [vmem:[#allocation4 + $0xa8] sm:$0xff]  ;;  %v1113_v12 = vld [vmem:[#allocation9 + $0x40] sm:$0xff] }
 0x42e   :  { %v810_v2 = vmul.f32 %v1253_v38, %v809_v0  ;;  %v846_v10 = vsub.f32 1.0, %v840_v13  ;;  %v848_v15 = vmul.f32 %v840_v13, %v2035_v47 }
 0x430   :  { %v811_v6 = vadd.f32 %v1253_v38, %v810_v2 }
 0x432   :  { %v815_v40 = vsel %vm814_vm1, %v1253_v38, %v811_v6 }
 0x433   :  { %v820_v57 = vsel %vm817_vm2, %v819_v7, %v815_v40 }
 0x434   :  { %v843_v43 = vmul.f32 %v842_v28, %v820_v57  ;;  %v1118_v57 = vld [vmem:[#allocation9 + $0x68] sm:$0xff] }
 0x436   :  { %v844_v58 = vadd.f32 %v843_v43, %v741_v63  ;;  %v1119_v63 = vld [vmem:[#allocation9 + $0x70] sm:$0xff]  ;;  %v1116_v43 = vld [vmem:[#allocation9 + $0x58] sm:$0xff] }
 0x437   :  { %1126 = vmatpush.msra.mxu0 %v1119_v63 }
 0x438   :  { %1254 = vtanh.f32 %v844_v58  ;;  %v1114_v58 = vld [vmem:[#allocation9 + $0x48] sm:$0xff] }
 0x439   :  { %1127 = vmatpush.msra.mxu0 %v1118_v57 }
 0x43b   :  { %1128 = vmatpush.msra.mxu0 %v1117_v61 }
 0x43d   :  { %1129 = vmatpush.msra.mxu0 %v1116_v43 }
 0x43e   :  { %v1255_v11 = vpop.eup %1254 }
 0x43f   :  { %v847_v20 = vmul.f32 %v1255_v11, %v846_v10  ;;  %1130 = vmatpush.msra.mxu0 %v1115_v62  ;;  %v1112_v10 = vld [vmem:[#allocation9 + $0x38] sm:$0xff] }
 0x441   :  { %v2065_v17 = vadd.f32 %v848_v15, %v847_v20  ;;  %1131 = vmatpush.msra.mxu0 %v1114_v58  ;;  %v1111_v20 = vld [vmem:[#allocation9 + $0x30] sm:$0xff] }
 0x443   :  { %879 = vmatmul.f32.vlgmr.msra.gmra.mxu2 %v2065_v17  ;;  %899 = vmatmul.f32.vlgmr.msra.gmra.mxu3 %v2065_v17 }
 0x444   :  { %919 = vmatmul.f32.vlgmr.msrb.gmra.mxu0 %v2065_v17 }
 0x445   :  { %1132 = vmatpush.msra.mxu0 %v1113_v12 }
 0x447   :  { %1133 = vmatpush.msra.mxu0 %v1112_v10 }
 0x449   :  { %1134 = vmatpush.msra.mxu0 %v1111_v20 }
 0x4c1   :  { %v920_v39 = vpop.f32.mrf.mxu0 }
 0x4c2   :  { %v963_v53 = vadd.f32 %v2061_v19, %v920_v39  ;;  %v492_v39 = vpop.permute.xlu1 %491 }
 0x4c6   :  { %v880_v24 = vpop.f32.mrf.mxu2  ;;  %v900_v25 = vpop.f32.mrf.mxu3 }
 0x4c7   :  { %v923_v29 = vadd.f32 %v880_v24, %v860_v21  ;;  %v943_v30 = vadd.f32 %v900_v25, %v861_v22  ;;  %v982_v21 = vld [vmem:[#allocation4 + $0xb0] sm:$0xff]  ;;  %v1110_v22 = vld [vmem:[#allocation9 + $0x28] sm:$0xff]  ;;  %v1109_v25 = vld [vmem:[#allocation9 + $0x20] sm:$0xff] }
 0x4c8   :  { %1135 = vmatpush.msra.mxu0 %v1110_v22 }
 0x4c9   :  { %v1177_v32 = vmul.f32 -1.442695, %v923_v29  ;;  %v1178_v33 = vmul.f32 -1.442695, %v943_v30  ;;  %v1108_v30 = vld [vmem:[#allocation9 + $0x18] sm:$0xff] }
 0x4ca   :  { %1136 = vmatpush.msra.mxu0 %v1109_v25 }
 0x4cb   :  { %1256 = vpow2.f32 %v1177_v32 }
 0x4cc   :  { %1258 = vpow2.f32 %v1178_v33  ;;  %1137 = vmatpush.msra.mxu0 %v1108_v30  ;;  %v1107_v33 = vld [vmem:[#allocation9 + $0x10] sm:$0xff] }
 0x4ce   :  { %1138 = vmatpush.msra.mxu0 %v1107_v33 }
 0x4d1   :  { %v1257_v36 = vpop.eup %1256 }
 0x4d2   :  { %v1259_v37 = vpop.eup %1258  ;;  %v927_v41 = vadd.f32 1.0, %v1257_v36 }
 0x4d3   :  { %v947_v44 = vadd.f32 1.0, %v1259_v37 }
 0x4d4   :  { %1260 = vrcp.f32 %v927_v41  ;;  %v939_v52 = vand.u32 2147483648, %v927_v41  ;;  %v937_v16 = vand.u32 2147483647, %v927_v41  ;;  %vm933_vm9 = vweird.f32 %v927_v41 }
 0x4d5   :  { %1262 = vrcp.f32 %v947_v44  ;;  %v959_v50 = vand.u32 2147483648, %v947_v44  ;;  %vm953_vm13 = vweird.f32 %v947_v44  ;;  %v957_v0 = vand.u32 2147483647, %v947_v44 }
 0x4d6   :  { %v940_v27 = vor.u32 1.1754944e-38, %v939_v52  ;;  %vm938_vm11 = vcmp.eq.f32.partialorder %v937_v16, 8.507059e+37 }
 0x4d7   :  { %v960_v3 = vor.u32 1.1754944e-38, %v959_v50  ;;  %vm958_vm15 = vcmp.eq.f32.partialorder %v957_v0, 8.507059e+37 }
 0x4da   :  { %v1261_v34 = vpop.eup %1260 }
 0x4db   :  { %v1263_v45 = vpop.eup %1262  ;;  %v929_v46 = vmul.f32 %v1261_v34, %v927_v41  ;;  %vm934_vm8 = vweird.f32 %v1261_v34  ;;  %v1106_v41 = vld [vmem:[#allocation9 + $0x8] sm:$0xff] }
 0x4dc   :  { %v949_v14 = vmul.f32 %v1263_v45, %v947_v44  ;;  %vm935_vm10 = vmor %vm933_vm9, %vm934_vm8  ;;  %vm954_vm12 = vweird.f32 %v1263_v45  ;;  %1139 = vmatpush.msra.mxu0 %v1106_v41  ;;  %v1105_v44 = vld [vmem:[#allocation9] sm:$0xff] }
 0x4dd   :  { %v930_v48 = vsub.f32 1.0, %v929_v46  ;;  %vm955_vm14 = vmor %vm953_vm13, %vm954_vm12 }
 0x4de   :  { %v950_v42 = vsub.f32 1.0, %v949_v14  ;;  %1140 = vmatpush.msra.mxu0 %v1105_v44  ;;  %v250_v14 = vpop.permute.xlu0 %249 }
 0x4df   :  { %v931_v9 = vmul.f32 %v1261_v34, %v930_v48  ;;  %vm251_vm7 = vcmp.eq.s32.totalorder %v250_v14, 1 }
 0x4e0   :  { %v951_v18 = vmul.f32 %v1263_v45, %v950_v42  ;;  %v252_v57 = vsel %vm251_vm7, %v1771_v60, 0.0 }
 0x4e1   :  { %v932_v23 = vadd.f32 %v1261_v34, %v931_v9 }
 0x4e2   :  { %v952_v38 = vadd.f32 %v1263_v45, %v951_v18 }
 0x4e3   :  { %v936_v54 = vsel %vm935_vm10, %v1261_v34, %v932_v23  ;;  %vm493_vm10 = vcmp.eq.s32.totalorder %v492_v39, 1 }
 0x4e4   :  { %v941_v35 = vsel %vm938_vm11, %v940_v27, %v936_v54  ;;  %v956_v2 = vsel %vm955_vm14, %v1263_v45, %v952_v38  ;;  %v734_v38 = vpop.permute.xlu2 %733 }
 0x4e5   :  { %v964_v49 = vmul.f32 %v963_v53, %v941_v35  ;;  %v961_v4 = vsel %vm958_vm15, %v960_v3, %v956_v2  ;;  %vm735_vm12 = vcmp.eq.s32.totalorder %v734_v38, 1 }
 0x4e6   :  { %v967_v5 = vsub.f32 1.0, %v961_v4  ;;  %v969_v28 = vmul.f32 %v961_v4, %v2065_v17  ;;  %v371_v0 = vpop.permute.xlu0 %370 }
 0x4e7   :  { %v965_v1 = vadd.f32 %v964_v49, %v862_v31  ;;  %v983_v49 = vld [vmem:[#allocation4 + $0xb8] sm:$0xff]  ;;  %vm372_vm9 = vcmp.eq.s32.totalorder %v371_v0, 1 }
 0x4e8   :  { %v373_v43 = vsel %vm372_vm9, %v1828_v26, %v252_v57 }
 0x4e9   :  { %1264 = vtanh.f32 %v965_v1 }
 0x4ec   :  { %v855_v63 = vpop.permute.xlu2 %854 }
 0x4ed   :  { %vm856_vm13 = vcmp.eq.s32.totalorder %v855_v63, 1 }
 0x4ee   :  { %v976_v61 = vpop.permute.xlu0 %975 }
 0x4ef   :  { %v1265_v6 = vpop.eup %1264  ;;  %vm977_vm14 = vcmp.eq.s32.totalorder %v976_v61, 1 }
 0x4f0   :  { %v968_v7 = vmul.f32 %v1265_v6, %v967_v5 }
 0x4f2   :  { %v2074_v40 = vadd.f32 %v969_v28, %v968_v7  ;;  %v613_v7 = vpop.permute.xlu1 %612 }
 0x4f3   :  { %vm614_vm11 = vcmp.eq.s32.totalorder %v613_v7, 1 }
 0x4f4   :  { %1000 = vmatmul.f32.vlgmr.msrb.gmra.mxu1 %v2074_v40  ;;  %1020 = vmatmul.f32.vlgmr.msrb.gmra.mxu2 %v2074_v40 }
 0x4f5   :  { %1040 = vmatmul.f32.vlgmr.msrb.gmra.mxu3 %v2074_v40 }
 0x571   :  { %v1001_v13 = vpop.f32.mrf.mxu1 }
 0x572   :  { %v1044_v11 = vadd.f32 %v1001_v13, %v981_v8  ;;  %v494_v8 = vsel %vm493_vm10, %v1885_v56, %v373_v43  ;;  %v1195_v56 = vld [vmem:[%s2099_s5] ss:$0 sm:$0xff] }
 0x573   :  { %v615_v12 = vsel %vm614_vm11, %v1966_v59, %v494_v8 }
 0x574   :  { %v1179_v15 = vmul.f32 -1.442695, %v1044_v11  ;;  %v1097_v11 = vpop.permute.xlu1 %1096  ;;  %v736_v20 = vsel %vm735_vm12, %v2035_v47, %v615_v12 }
 0x575   :  { %v857_v60 = vsel %vm856_vm13, %v2065_v17, %v736_v20  ;;  %vm1098_vm15 = vcmp.eq.s32.totalorder %v1097_v11, 1 }
 0x576   :  { %1266 = vpow2.f32 %v1179_v15  ;;  %v978_v26 = vsel %vm977_vm14, %v2074_v40, %v857_v60 }
 0x577   :  { %v1021_v24 = vpop.f32.mrf.mxu2 }
 0x578   :  { %v1064_v29 = vadd.f32 %v1021_v24, %v982_v21  ;;  %v1041_v18 = vpop.f32.mrf.mxu3 }
 0x579   :  { %v1084_v35 = vadd.f32 %v2061_v19, %v1041_v18 }
 0x57a   :  { %v1180_v32 = vmul.f32 -1.442695, %v1064_v29 }
 0x57c   :  { %v1267_v36 = vpop.eup %1266  ;;  %1268 = vpow2.f32 %v1180_v32 }
 0x57d   :  { %v1048_v37 = vadd.f32 1.0, %v1267_v36 }
 0x57f   :  { %1270 = vrcp.f32 %v1048_v37  ;;  %v1060_v52 = vand.u32 2147483648, %v1048_v37  ;;  %v1058_v9 = vand.u32 2147483647, %v1048_v37  ;;  %vm1054_vm1 = vweird.f32 %v1048_v37 }
 0x581   :  { %v1061_v53 = vor.u32 1.1754944e-38, %v1060_v52  ;;  %vm1059_vm3 = vcmp.eq.f32.partialorder %v1058_v9, 8.507059e+37 }
 0x582   :  { %v1269_v55 = vpop.eup %1268 }
 0x583   :  { %v1068_v34 = vadd.f32 1.0, %v1269_v55 }
 0x585   :  { %v1271_v45 = vpop.eup %1270  ;;  %1272 = vrcp.f32 %v1068_v34  ;;  %v1080_v3 = vand.u32 2147483648, %v1068_v34  ;;  %v1078_v4 = vand.u32 2147483647, %v1068_v34  ;;  %vm1074_vm5 = vweird.f32 %v1068_v34 }
 0x586   :  { %v1050_v46 = vmul.f32 %v1271_v45, %v1048_v37  ;;  %vm1055_vm0 = vweird.f32 %v1271_v45 }
 0x587   :  { %vm1056_vm2 = vmor %vm1054_vm1, %vm1055_vm0  ;;  %v1081_v51 = vor.u32 1.1754944e-38, %v1080_v3  ;;  %vm1079_vm8 = vcmp.eq.f32.partialorder %v1078_v4, 8.507059e+37 }
 0x588   :  { %v1051_v48 = vsub.f32 1.0, %v1050_v46 }
 0x58a   :  { %v1052_v42 = vmul.f32 %v1271_v45, %v1051_v48 }
 0x58b   :  { %v1273_v16 = vpop.eup %1272 }
 0x58c   :  { %v1070_v23 = vmul.f32 %v1273_v16, %v1068_v34  ;;  %v1053_v27 = vadd.f32 %v1271_v45, %v1052_v42  ;;  %vm1075_vm4 = vweird.f32 %v1273_v16 }
 0x58d   :  { %vm1076_vm6 = vmor %vm1074_vm5, %vm1075_vm4 }
 0x58e   :  { %v1071_v54 = vsub.f32 1.0, %v1070_v23  ;;  %v1057_v31 = vsel %vm1056_vm2, %v1271_v45, %v1053_v27 }
 0x58f   :  { %v1062_v50 = vsel %vm1059_vm3, %v1061_v53, %v1057_v31 }
 0x590   :  { %v1085_v1 = vmul.f32 %v1084_v35, %v1062_v50  ;;  %v1072_v2 = vmul.f32 %v1273_v16, %v1071_v54 }
 0x592   :  { %v1086_v5 = vadd.f32 %v1085_v1, %v983_v49  ;;  %v1073_v6 = vadd.f32 %v1273_v16, %v1072_v2 }
 0x594   :  { %1274 = vtanh.f32 %v1086_v5  ;;  %v1077_v28 = vsel %vm1076_vm6, %v1273_v16, %v1073_v6 }
 0x595   :  { %v1082_v19 = vsel %vm1079_vm8, %v1081_v51, %v1077_v28 }
 0x596   :  { %v1088_v62 = vsub.f32 1.0, %v1082_v19  ;;  %v1090_v10 = vmul.f32 %v1082_v19, %v2074_v40 }
 0x59a   :  { %v1275_v58 = vpop.eup %1274 }
 0x59b   :  { %v1089_v13 = vmul.f32 %v1275_v58, %v1088_v62 }
 0x59d   :  { %v1091_v15 = vadd.f32 %v1090_v10, %v1089_v13 }
 0x59f   :  { %v1099_v21 = vsel %vm1098_vm15, %v1091_v15, %v978_v26 }
 0x5a0   :  { %1141 = vmatmul.f32.vlgmr.msra.gmra.mxu0 %v1099_v21 }
 0x61d   :  { %v1142_v59 = vpop.f32.mrf.mxu0 }
 0x61e   :  { %v1143_v47 = vadd.f32 %v1195_v56, %v1142_v59 }
 0x620   :  { %1145 = vst [vmem:[#allocation10] sm:$0xff] %v1143_v47 }
 0x621   :  { %1156 = dma.vmem_to_hbm [thread:$0]  %s1152_s20, 128, %s1154_s23, [#allocation6]  }
 0x622   :  { %1425 = dma.done.wait [#allocation6], 128  }
 0x623   :  { %1426 = vsyncadd [#allocation6], 4294967168 }
 0x624   :  { %1161 = vsyncpa [#allocation5], 1 }
 0x625   :  { %1162 = vsyncpa [#allocation8], 1 }
 0x626   :  { %1163 = vsyncpa [#allocation6], 1 }

</bundles_post_ra>
